<compile_context>
chip_gen: v5e
topology: v5e:2x2
jax: 0.10.0
libtpu: 0.0.40
codegen_flags: <defaults>
</compile_context>

<pallas_src>
import functools

import jax
import jax.numpy as jnp
from jax.experimental import pallas as pl
from jax.experimental.pallas import tpu as pltpu

_INV_SQRT2 = 0.7071067811865476


# --------------------------------------------------------------------------- kernels
def _activation(h, use_vit_mlp, gelu_approx):
    if not use_vit_mlp:
        return jnp.maximum(h, 0.0)
    if gelu_approx:
        # tanh-approx GELU: transcendental goes to the EUP (separate VLIW slot; use on v5e).
        return jax.nn.gelu(h, approximate=True)
    # Exact GELU, matching torch.nn.GELU(approximate='none').
    return 0.5 * h * (1.0 + jax.lax.erf(h * _INV_SQRT2))


def _mlp_kernel_resident(x_ref, w1_ref, b1_ref, w2_ref, b2_ref, o_ref, *,
                         use_vit_mlp, gelu_approx):
    """Single inter_dim chunk: both weights VMEM-resident, no accumulator scratch."""
    h = jnp.dot(x_ref[...], w1_ref[...], preferred_element_type=jnp.float32)
    h = h + b1_ref[...].astype(jnp.float32)
    h = _activation(h, use_vit_mlp, gelu_approx)
    out = jnp.dot(h.astype(w2_ref.dtype), w2_ref[...],
                  preferred_element_type=jnp.float32)
    o_ref[...] = (out + b2_ref[...].astype(jnp.float32)).astype(o_ref.dtype)


def _mlp_kernel_chunked(x_ref, w1_ref, b1_ref, w2_ref, b2_ref, o_ref, acc_ref, *,
                        use_vit_mlp, gelu_approx):
    """inter_dim chunked over grid axis 1 with an f32 VMEM accumulator."""
    k = pl.program_id(1)

    @pl.when(k == 0)
    def _init():
        acc_ref[...] = jnp.zeros_like(acc_ref)

    # First linear chunk: (TM, D) @ (D, TI), f32 accumulation on the MXU.
    h = jnp.dot(x_ref[...], w1_ref[...], preferred_element_type=jnp.float32)
    # b1 is resident as (k_steps, TI); pick the active chunk with a sublane slice.
    h = h + b1_ref[pl.ds(k, 1), :].astype(jnp.float32)
    h = _activation(h, use_vit_mlp, gelu_approx)

    # Second linear chunk: (TM, TI) @ (TI, D), accumulated over inter_dim chunks.
    acc_ref[...] += jnp.dot(h.astype(w2_ref.dtype), w2_ref[...],
                            preferred_element_type=jnp.float32)

    @pl.when(k == pl.num_programs(1) - 1)
    def _finalize():
        o_ref[...] = (acc_ref[...] + b2_ref[...].astype(jnp.float32)).astype(o_ref.dtype)


# --------------------------------------------------------------------------- host-side helpers
def prepare_mlp_params(w1, b1, w2, b2, compute_dtype=jnp.bfloat16):
    """One-time parameter prep (keep OUT of the per-call hot path).

    PyTorch Linear convention in: w1 (inter_dim, model_dim), b1 (inter_dim,),
    w2 (model_dim, inter_dim), b2 (model_dim,).  Returns (in, out)-transposed weights
    cast to `compute_dtype` (bf16 by default -> bf16 MXU mode; pass jnp.float32 / None
    for full-f32 parity) and f32 biases shaped (1, N).
    """
    w1_t = jnp.transpose(w1)              # (model_dim, inter_dim)
    w2_t = jnp.transpose(w2)              # (inter_dim, model_dim)
    if compute_dtype is not None:
        w1_t = w1_t.astype(compute_dtype)
        w2_t = w2_t.astype(compute_dtype)
    b1_2d = b1.reshape(1, -1).astype(jnp.float32)
    b2_2d = b2.reshape(1, -1).astype(jnp.float32)
    return w1_t, b1_2d, w2_t, b2_2d


def _vmem_capacity_bytes():
    try:
        return int(pltpu.get_tpu_info().vmem_capacity_bytes)
    except Exception:
        return 64 << 20                     # conservative (v7x-sized) fallback


def _divisors(n):
    out = set()
    d = 1
    while d * d <= n:
        if n % d == 0:
            out.add(d)
            out.add(n // d)
        d += 1
    return sorted(out, reverse=True)


def _resident_spec(block_shape, index_map):
    """BlockSpec for a block whose index never changes: single pipeline buffer."""
    buffered = getattr(pl, "Buffered", None)
    if buffered is not None:
        try:
            return pl.BlockSpec(block_shape, index_map, pipeline_mode=buffered(1))
        except TypeError:
            pass
    return pl.BlockSpec(block_shape, index_map)


def mlp_forward(x, w1_t, b1_2d, w2_t, b2_2d, *, use_vit_mlp=True, gelu_approx=False,
                tm=None, ti=None, out_dtype=None):
    """x: (..., model_dim); weights/biases as produced by prepare_mlp_params."""
    model_dim = x.shape[-1]
    inter_dim = w1_t.shape[1]
    orig_shape = x.shape
    compute_dtype = w1_t.dtype
    out_dtype = out_dtype if out_dtype is not None else x.dtype

    # Feed activations in the compute dtype (bf16 by default): halves the x DMA and
    # removes the per-chunk in-kernel cast of the resident x tile.
    x2 = x.reshape(-1, model_dim).astype(compute_dtype)
    tokens = x2.shape[0]

    x_bytes = jnp.dtype(compute_dtype).itemsize
    o_bytes = jnp.dtype(out_dtype).itemsize

    # ---- Generation-aware VMEM budget -------------------------------------
    vmem_cap = _vmem_capacity_bytes()
    big_vmem = vmem_cap >= (96 << 20)            # v5e/v6e: 128 MiB;  v7x: 64 MiB
    vmem_ceiling = (108 << 20) if big_vmem else (52 << 20)
    budget = vmem_ceiling - (12 << 20)           # headroom for compiler scratch

    # ---- Token tile --------------------------------------------------------
    if tm is None:
        tm = 512 if big_vmem else 256
    if tokens <= 128:
        TM = tokens
    elif tokens <= 2 * tm:
        # Keep >= 2 token tiles so the "parallel" axis can feed both v7x TensorCores.
        TM = max(128, ((tokens // 2) // 8) * 8)
    else:
        TM = tm
    # Partial last token tile: rows past `tokens` hold unspecified buffer data; they flow
    # through erf/dot independently per row and are masked on store, so results stay correct.

    # ---- inter_dim chunk ----------------------------------------------------
    def footprint(ti_c):
        single = ti_c == inter_dim
        w_buf = 1 if single else 2
        est = 2 * TM * model_dim * x_bytes                    # double-buffered x tiles
        est += 2 * TM * model_dim * o_bytes                   # double-buffered out tiles
        est += w_buf * 2 * model_dim * ti_c * x_bytes         # w1 + w2 chunks
        est += (inter_dim + model_dim) * 4 + 8 * ti_c * 4     # resident biases (f32, padded)
        est += TM * ti_c * (4 + x_bytes)                      # f32 h + compute-dtype copy
        est += TM * model_dim * 4                             # second-dot result temp
        if not single:
            est += TM * model_dim * 4                         # f32 accumulator scratch
        return est

    if ti is None:
        ti_req = inter_dim if big_vmem else min(inter_dim, 1024)
    else:
        ti_req = min(ti, inter_dim)
    cands = [d for d in _divisors(inter_dim)
             if d <= ti_req and (d % 128 == 0 or d == inter_dim)]
    if not cands:                                # pathological inter_dim: keep it whole
        cands = [inter_dim]
    TI = next((c for c in cands if footprint(c) <= budget), cands[-1])

    k_steps = inter_dim // TI
    single_chunk = k_steps == 1
    est = footprint(TI)
    vmem_limit = int(min(vmem_ceiling, max(est + (12 << 20), 32 << 20)))

    # b1 resident as (k_steps, TI): active chunk selected in-kernel, no per-step DMA.
    b1_arg = b1_2d.reshape(k_steps, TI)

    num_token_tiles = pl.cdiv(tokens, TM)

    if single_chunk:
        grid = (num_token_tiles,)
        kernel = functools.partial(_mlp_kernel_resident,
                                   use_vit_mlp=use_vit_mlp, gelu_approx=gelu_approx)
        in_specs = [
            pl.BlockSpec((TM, model_dim), lambda i: (i, 0)),                   # x tile
            _resident_spec((model_dim, inter_dim), lambda i: (0, 0)),          # w1 (resident)
            _resident_spec((k_steps, TI), lambda i: (0, 0)),                   # b1 (resident)
            _resident_spec((inter_dim, model_dim), lambda i: (0, 0)),          # w2 (resident)
            _resident_spec((1, model_dim), lambda i: (0, 0)),                  # b2 (resident)
        ]
        out_specs = pl.BlockSpec((TM, model_dim), lambda i: (i, 0))
        scratch_shapes = []
        dim_sem = ("parallel",)
    else:
        grid = (num_token_tiles, k_steps)
        kernel = functools.partial(_mlp_kernel_chunked,
                                   use_vit_mlp=use_vit_mlp, gelu_approx=gelu_approx)
        in_specs = [
            pl.BlockSpec((TM, model_dim), lambda i, k: (i, 0)),                # x tile
            pl.BlockSpec((model_dim, TI), lambda i, k: (0, k)),                # w1 chunk
            _resident_spec((k_steps, TI), lambda i, k: (0, 0)),                # b1 (resident)
            pl.BlockSpec((TI, model_dim), lambda i, k: (k, 0)),                # w2 chunk
            _resident_spec((1, model_dim), lambda i, k: (0, 0)),               # b2 (resident)
        ]
        out_specs = pl.BlockSpec((TM, model_dim), lambda i, k: (i, 0))
        scratch_shapes = [pltpu.VMEM((TM, model_dim), jnp.float32)]
        dim_sem = ("parallel", "arbitrary")

    out = pl.pallas_call(
        kernel,
        out_shape=jax.ShapeDtypeStruct((tokens, model_dim), out_dtype),
        grid_spec=pltpu.PrefetchScalarGridSpec(
            num_scalar_prefetch=0,
            grid=grid,
            in_specs=in_specs,
            out_specs=out_specs,
            scratch_shapes=scratch_shapes,
        ),
        compiler_params=pltpu.CompilerParams(
            dimension_semantics=dim_sem,
            vmem_limit_bytes=vmem_limit,
        ),
    )(x2, w1_t, b1_arg, w2_t, b2_2d)

    return out.reshape(orig_shape)


# --------------------------------------------------------------------------- demo / self-check
def _init_linear(key, out_features, in_features):
    # Deterministic init mimicking torch.nn.Linear (uniform +/- 1/sqrt(in)).
    kw, kb = jax.random.split(key)
    bound = float(in_features) ** -0.5
    w = jax.random.uniform(kw, (out_features, in_features), jnp.float32, -bound, bound)
    b = jax.random.uniform(kb, (out_features,), jnp.float32, -bound, bound)
    return w, b


def _ref_mlp(x, w1, b1, w2, b2, use_vit_mlp):
    hi = jax.lax.Precision.HIGHEST
    h = jnp.dot(x, w1.T, precision=hi) + b1
    if use_vit_mlp:
        h = 0.5 * h * (1.0 + jax.lax.erf(h * _INV_SQRT2))
    else:
        h = jnp.maximum(h, 0.0)
    return jnp.dot(h, w2.T, precision=hi) + b2


if __name__ == "__main__":
    # 128-aligned dims so the MXU runs full tiles and output stores are lane-dense;
    # 256 tokens -> 2 token tiles of 128 (exercises the pipelined / parallel grid).
    model_dim = 128
    inter_dim = 256
    batch, seq = 2, 128

    key = jax.random.PRNGKey(0)
    kx, k1, k2 = jax.random.split(key, 3)

    x = jax.random.normal(kx, (batch, seq, model_dim), jnp.float32)
    w1, b1 = _init_linear(k1, inter_dim, model_dim)
    w2, b2 = _init_linear(k2, model_dim, inter_dim)

    ok = True

    # f32 parity path (exact GELU and ReLU), weights-resident kernel.
    params_f32 = prepare_mlp_params(w1, b1, w2, b2, compute_dtype=jnp.float32)
    for use_vit in (True, False):
        out = jax.block_until_ready(mlp_forward(x, *params_f32, use_vit_mlp=use_vit))
        ref = _ref_mlp(x, w1, b1, w2, b2, use_vit)
        if not jnp.allclose(out, ref, atol=2e-2, rtol=2e-2):
            ok = False
            print("f32 path mismatch (use_vit=%s): max abs err %.3e"
                  % (use_vit, float(jnp.max(jnp.abs(out - ref)))))

    # Default bf16-MXU path (weights cast once, f32 accumulation), weights-resident.
    params_bf16 = prepare_mlp_params(w1, b1, w2, b2)
    ref = _ref_mlp(x, w1, b1, w2, b2, True)
    out_bf16 = jax.block_until_ready(mlp_forward(x, *params_bf16, use_vit_mlp=True))
    if not jnp.allclose(out_bf16, ref, atol=1e-1, rtol=1e-1):
        ok = False
        print("bf16 path mismatch: max abs err %.3e"
              % float(jnp.max(jnp.abs(out_bf16 - ref))))

    # Force the chunked (inter_dim-reduction) kernel path with ti=128 (2 chunks).
    out_chunked = jax.block_until_ready(
        mlp_forward(x, *params_bf16, use_vit_mlp=True, ti=128))
    if not jnp.allclose(out_chunked, ref, atol=1e-1, rtol=1e-1):
        ok = False
        print("chunked path mismatch: max abs err %.3e"
              % float(jnp.max(jnp.abs(out_chunked - ref))))

    if ok:
        print("KERNEL_OK")
</pallas_src>

<mosaic_0001>
module attributes {stable_mosaic.version = 11 : i64} {
  func.func @_mlp_kernel_resident(%arg0: i32, %arg1: memref<128x128xf32, #tpu.memory_space<vmem>>, %arg2: memref<128x256xf32, #tpu.memory_space<vmem>>, %arg3: memref<1x256xf32, #tpu.memory_space<vmem>>, %arg4: memref<256x128xf32, #tpu.memory_space<vmem>>, %arg5: memref<1x128xf32, #tpu.memory_space<vmem>>, %arg6: memref<128x128xf32, #tpu.memory_space<vmem>>) attributes {dimension_semantics = [#tpu.dimension_semantics<parallel>], iteration_bounds = array<i64: 2>, scalar_prefetch = 0 : i64, scratch_operands = 0 : i64, tpu.core_type = #tpu.core_type<tc>, window_params = [{transform_indices = @transform_0, window_bounds = array<i64: 128, 128>}, {pipeline_mode = #tpu.pipeline_mode<synchronous>, transform_indices = @transform_1, window_bounds = array<i64: 128, 256>}, {pipeline_mode = #tpu.pipeline_mode<synchronous>, transform_indices = @transform_2, window_bounds = array<i64: 1, 256>}, {pipeline_mode = #tpu.pipeline_mode<synchronous>, transform_indices = @transform_3, window_bounds = array<i64: 256, 128>}, {pipeline_mode = #tpu.pipeline_mode<synchronous>, transform_indices = @transform_4, window_bounds = array<i64: 1, 128>}, {transform_indices = @transform_5, window_bounds = array<i64: 128, 128>}]} {
    %c0 = arith.constant 0 : index
    %c0_0 = arith.constant 0 : index
    %0 = vector.load %arg1[%c0, %c0_0] : memref<128x128xf32, #tpu.memory_space<vmem>>, vector<128x128xf32>
    %c0_1 = arith.constant 0 : index
    %c0_2 = arith.constant 0 : index
    %1 = vector.load %arg2[%c0_1, %c0_2] : memref<128x256xf32, #tpu.memory_space<vmem>>, vector<128x256xf32>
    %cst = arith.constant dense<0.000000e+00> : vector<128x256xf32>
    %2 = tpu.matmul %0, %1, %cst {dimension_numbers = #tpu.dot_dimension_numbers<[1], [0], [0], [1], [0, 0, 1, 1], [], []>} : vector<128x128xf32>, vector<128x256xf32>, vector<128x256xf32> -> vector<128x256xf32>
    %c0_3 = arith.constant 0 : index
    %c0_4 = arith.constant 0 : index
    %3 = vector.load %arg3[%c0_3, %c0_4] : memref<1x256xf32, #tpu.memory_space<vmem>>, vector<1x256xf32>
    %4 = vector.broadcast %3 : vector<1x256xf32> to vector<128x256xf32>
    %5 = arith.addf %2, %4 : vector<128x256xf32>
    %cst_5 = arith.constant 5.000000e-01 : f32
    %6 = vector.broadcast %cst_5 : f32 to vector<128x256xf32>
    %7 = arith.mulf %6, %5 : vector<128x256xf32>
    %cst_6 = arith.constant 0.707106769 : f32
    %8 = vector.broadcast %cst_6 : f32 to vector<128x256xf32>
    %9 = arith.mulf %5, %8 : vector<128x256xf32>
    %10 = math.erf %9 : vector<128x256xf32>
    %cst_7 = arith.constant 1.000000e+00 : f32
    %11 = vector.broadcast %cst_7 : f32 to vector<128x256xf32>
    %12 = arith.addf %11, %10 : vector<128x256xf32>
    %13 = arith.mulf %7, %12 : vector<128x256xf32>
    %c0_8 = arith.constant 0 : index
    %c0_9 = arith.constant 0 : index
    %14 = vector.load %arg4[%c0_8, %c0_9] : memref<256x128xf32, #tpu.memory_space<vmem>>, vector<256x128xf32>
    %cst_10 = arith.constant dense<0.000000e+00> : vector<128x128xf32>
    %15 = tpu.matmul %13, %14, %cst_10 {dimension_numbers = #tpu.dot_dimension_numbers<[1], [0], [0], [1], [0, 0, 1, 1], [], []>} : vector<128x256xf32>, vector<256x128xf32>, vector<128x128xf32> -> vector<128x128xf32>
    %c0_11 = arith.constant 0 : index
    %c0_12 = arith.constant 0 : index
    %16 = vector.load %arg5[%c0_11, %c0_12] : memref<1x128xf32, #tpu.memory_space<vmem>>, vector<1x128xf32>
    %17 = vector.broadcast %16 : vector<1x128xf32> to vector<128x128xf32>
    %18 = arith.addf %15, %17 : vector<128x128xf32>
    %c0_13 = arith.constant 0 : index
    %c0_14 = arith.constant 0 : index
    %19 = vector.load %arg6[%c0_13, %c0_14] : memref<128x128xf32, #tpu.memory_space<vmem>>, vector<128x128xf32>
    tpu.vector_store %arg6[%c0_13, %c0_14], %18 {strides = array<i32>} : memref<128x128xf32, #tpu.memory_space<vmem>>, vector<128x128xf32>,
    return
  }
  func.func @transform_0(%arg0: i32) -> (i32, i32) {
    %c0_i32 = arith.constant 0 : i32
    %c0_i32_0 = arith.constant 0 : i32
    return %arg0, %c0_i32 : i32, i32
  }
  func.func @transform_1(%arg0: i32) -> (i32, i32) {
    %c0_i32 = arith.constant 0 : i32
    %c0_i32_0 = arith.constant 0 : i32
    %c0_i32_1 = arith.constant 0 : i32
    return %c0_i32, %c0_i32_0 : i32, i32
  }
  func.func @transform_2(%arg0: i32) -> (i32, i32) {
    %c0_i32 = arith.constant 0 : i32
    %c0_i32_0 = arith.constant 0 : i32
    %c0_i32_1 = arith.constant 0 : i32
    return %c0_i32, %c0_i32_0 : i32, i32
  }
  func.func @transform_3(%arg0: i32) -> (i32, i32) {
    %c0_i32 = arith.constant 0 : i32
    %c0_i32_0 = arith.constant 0 : i32
    %c0_i32_1 = arith.constant 0 : i32
    return %c0_i32, %c0_i32_0 : i32, i32
  }
  func.func @transform_4(%arg0: i32) -> (i32, i32) {
    %c0_i32 = arith.constant 0 : i32
    %c0_i32_0 = arith.constant 0 : i32
    %c0_i32_1 = arith.constant 0 : i32
    return %c0_i32, %c0_i32_0 : i32, i32
  }
  func.func @transform_5(%arg0: i32) -> (i32, i32) {
    %c0_i32 = arith.constant 0 : i32
    %c0_i32_0 = arith.constant 0 : i32
    return %arg0, %c0_i32 : i32, i32
  }
}

</mosaic_0001>

<bundles_post_ra>
// kernel: tpu_custom_call.1
= control target key start
LH: loop header
LB: loop body
LE: loop exit
PB: predicated region body
PF: predicated region fallthrough
CT: control target
= control target key end

     0   :  { %10 = vsyncpa [#allocation3], 0  ;;  %s4090_s0 = inlined_call_operand.hbm [shape: f32[256,128], index: 0, kind: input, shape index: {}]   ;;  %s4091_s1 = inlined_call_operand.hbm [shape: f32[128,256], index: 1, kind: input, shape index: {}]   ;;  %s4092_s2 = inlined_call_operand.hbm [shape: f32[1,256], index: 2, kind: input, shape index: {}]   ;;  %s4093_s3 = inlined_call_operand.hbm [shape: f32[256,128], index: 3, kind: input, shape index: {}]   ;;  %s4094_s4 = inlined_call_operand.vmem [shape: f32[1,128], index: 4, kind: input, shape index: {}]   ;;  %s4095_s5 = inlined_call_operand.hbm [shape: f32[256,128], index: 5, kind: output, shape index: {}]  }
   0x1   :  { %12 = vsyncpa [#allocation3 + $0x1], 0 }
   0x2   :  { %13 = vsyncpa [#allocation6], 0 }
   0x3   :  { %14 = vsyncpa [#allocation9], 0 }
   0x4   :  { %15 = vsyncpa [#allocation4], 0 }
   0x5   :  { %17 = vsyncpa [#allocation4 + $0x1], 0  ;;  %s2624_s18 = smov 0   ;;  %s2626_s19 = smov 0  }
   0x6   :  { %s2628_s20 = smov 0   ;;  %s2630_s21 = smov 0  }
   0x7 LB: > { %s2645_s22 = sadd.s32 4294967295, %s2583_s21   ;;  %s2187_s23 = sadd.s32 4294967294, %s2583_s21   ;;  %s2583_s21 = sphi %s2630_s21, %s4182_s21   ;;  %s2579_s20 = sphi %s2628_s20, %s4181_s20   ;;  %s2575_s19 = sphi %s2626_s19, %s4180_s19   ;;  %s2571_s18 = sphi %s2624_s18, %s4179_s18  }
   0x8   : > { %p43_p0 = scmp.ne.s32.totalorder %s2575_s19, %s2571_s18  ;;  %p44_p1 = scmp.eq.s32.totalorder %s2645_s22, 0 }
   0x9   : > { %p151_p2 = scmp.eq.s32.totalorder %s2645_s22, 1  ;;  %p157_p3 = scmp.eq.s32.totalorder %s2187_s23, 1 }
   0xa   : > { %p2654_p4 = por %p44_p1, %p43_p0  ;;  %p2188_p5 = scmp.ge.s32.totalorder %s2583_s21, 1 }
   0xb   : > { %p2659_p6 = por %p157_p3, %p43_p0  ;;  %p164_p7 = scmp.lt.s32.totalorder %s2583_s21, 3 }
   0xc   : > { %s175_s28 = sshll.u32 %s4091_s1, 4  ;;  %s2585_s30 = smov [#allocation5]   ;;  %s176_s28 = int_to_ptr.hbm [resolvable:$true] %s175_s28 }
   0xd   : > { %p2667_p8 = pnand %p2188_p5, %p164_p7  ;;  %s177_s6 = sshll.u32 %s2585_s30, 4  ;;  %s178_s6 = int_to_ptr.vmem [resolvable:$true] %s177_s6 }
   0xe   : > { %s190_s10 = sshll.u32 %s4092_s2, 4  ;;  %s2586_s11 = smov 256   ;;  %s191_s10 = int_to_ptr.hbm [resolvable:$true] %s190_s10 }
   0xf   : > { %p2257_p9 = pneg %p2667_p8  ;;  %s2587_s12 = smov 16  }
  0x10   : > { %s2588_s13 = smov [#allocation7]   ;;  %s201_s17 = sshll.u32 %s4093_s3, 4  ;;  %s202_s17 = int_to_ptr.hbm [resolvable:$true] %s201_s17 }
  0x11   : > { %p2675_p10 = pnand %p2257_p9, %p44_p1  ;;  %s192_s14 = sshll.u32 %s2588_s13, 4  ;;  %s193_s14 = int_to_ptr.vmem [resolvable:$true] %s192_s14 }
  0x12   : > { %s2589_s23 = smov [#allocation8]   ;;  %s4096_s27 = smov 128  }
  0x13   : > { %2260 = dma.hbm_to_vmem [thread:$0]  (!%p2675_p10), %s176_s28, 4096, %s178_s6, [#allocation6], %s2586_s11, %s2586_s11, %s2587_s12  }
  0x14   : > { %2263 = dma.hbm_to_vmem [thread:$0]  (!%p2675_p10), %s191_s10, 32, %s193_s14, [#allocation6]  }
  0x15   : > { %s203_s26 = sshll.u32 %s2589_s23, 4  ;;  %s2591_s28 = smov 8   ;;  %s204_s26 = int_to_ptr.vmem [resolvable:$true] %s203_s26 }
  0x16   : > { %2266 = dma.hbm_to_vmem [thread:$0]  (!%p2675_p10), %s202_s17, 4096, %s204_s26, [#allocation9], %s4096_s27, %s4096_s27, %s2591_s28  }
  0x17   : > { %s2696_s30 = sadd.s32 1, %s2583_s21   ;;  %s30_s8 = sadd.s32 1, %s2579_s20 }
  0x18   : > { %s27_s6 = ssub.s32 %s2583_s21, %s2696_s30  ;;  %p37_p13 = scmp.ne.s32.totalorder %s2579_s20, %s2575_s19 }
  0x19   : > { %p28_p12 = scmp.eq.s32.totalorder %s27_s6, 0  ;;  %p38_p0 = scmp.eq.s32.totalorder %s2583_s21, 0 }
  0x1a   : > { %p2709_p3 = por %p151_p2, %p37_p13  ;;  %p2278_p5 = scmp.lt.s32.totalorder %s2583_s21, 2 }
  0x1b   : > { %s2705_s9 = scalar_select %p28_p12, %s2579_s20, %s30_s8  }
  0x1c   : > { %s220_s7 = sand.u32 1, %s2579_s20   ;;  %s2239_s11 = sshll.u32 %s2583_s21, 7 }
  0x1d   : > { %p39_p7 = por %p38_p0, %p37_p13  ;;  %s2193_s12 = sshll.u32 %s220_s7, 7 }
  0x1e   : > { %s229_s15 = scalar_lea.hbm %s4090_s0, %s2239_s11  ;;  %s224_s17 = scalar_lea.vmem [#allocation2], %s2193_s12 }
  0x1f   : > { %s230_s16 = sshll.u32 %s229_s15, 4  ;;  %s232_s23 = sshll.u32 %s224_s17, 4  ;;  %s231_s16 = int_to_ptr.hbm [resolvable:$true] %s230_s16  ;;  %s233_s23 = int_to_ptr.vmem [resolvable:$true] %s232_s23 }
  0x20   : > { %p2719_p9 = pnand %p2278_p5, %p39_p7  ;;  %s221_s6 = scalar_lea.sflag [#allocation3], %s220_s7 }
  0x21   : > { %s2479_s8 = sshra.s32 %s231_s16, 4  ;;  %s2486_s12 = scalar_lea.hbm %s4090_s0, 256  ;;  %s2480_s8 = int_to_ptr.hbm [resolvable:$true] %s2479_s8 }
  0x22   : > { %s2481_s27 = scalar_lea.hbm %s2480_s8, 128  ;;  %p2483_p10 = pneg %p2719_p9 }
  0x23   : > { %p2482_p2 = scmp.ne.s32.totalorder %s2480_s8, %s2481_s27  ;;  %p2487_p0 = scmp.lt.s32.totalorder %s2480_s8, %s4090_s0 }
  0x24   : > { %p2488_p5 = scmp.lt.s32.totalorder %s2486_s12, %s2481_s27 }
  0x25   : > { %p2484_p12 = pnand %p2483_p10, %p2482_p2 }
  0x26   : > { %p2489_p7 = por %p2488_p5, %p2487_p0 }
  0x27   : > { %p2485_p13 = pneg %p2484_p12 }
  0x29   : > { %p2490_p11 = pnand %p2489_p7, %p2485_p13 }
  0x2b   : > { %2493 = shalt.err (!%p2490_p11)
}
  0x2c   : > { %s4109_s7 = smov 128   ;;  %244 = sbr.rel (%p2667_p8) target bundleno = 721 (0x2d1), region = 40 }
  0x2d   : > { %2270 = dma.hbm_to_vmem [thread:$0]  (!%p2719_p9), %s231_s16, 2048, %s233_s23, %s221_s6, %s4109_s7, %s4109_s7, %s2591_s28  }
  0x31   : > { %s2739_s17 = sand.u32 1, %s2575_s19  }
  0x32   : > { %s2197_s27 = sshll.u32 %s2739_s17, 7  ;;  %s247_s8 = scalar_lea.sflag [#allocation3], %s2739_s17 }
  0x33   : > { %s2745_s11 = scalar_lea.vmem [#allocation2], %s2197_s27 }
  0x34   : > { %2554 = dma.done.wait (%p2654_p4), %s247_s8, 2048  }
  0x35   : > { %2556 = vsyncadd (%p2654_p4), %s247_s8, 4294965248 }
  0x36   : > { %2558 = dma.done.wait (%p44_p1), [#allocation6], 4128  }
  0x37   : > { %2560 = vsyncadd (%p44_p1), [#allocation6], 4294963168 }
  0x38   : > { %2562 = dma.done.wait (%p44_p1), [#allocation9], 4096  }
  0x39   : > { %2564 = vsyncadd (%p44_p1), [#allocation9], 4294963200  ;;  %v341_v0 = vld [vmem:[#allocation5 + $0xf0] sm:$0xff]  ;;  %v342_v1 = vld [vmem:[#allocation5 + $0xf8] sm:$0xff]  ;;  %s4008_s28 = scalar_lea.vmem [#allocation10], %s2197_s27  ;;  %s2240_s16 = sshll.u32 %s2645_s22, 7 }
  0x3a   : > { %v339_v2 = vld [vmem:[#allocation5 + $0xe0] sm:$0xff]  ;;  %349 = vmatpush.msra.mxu0 %v341_v0  ;;  %414 = vmatpush.msra.mxu1 %v342_v1  ;;  %v340_v3 = vld [vmem:[#allocation5 + $0xe8] sm:$0xff]  ;;  %v337_v4 = vld [vmem:[#allocation5 + $0xd0] sm:$0xff]  ;;  %s2081_s6 = scalar_lea.hbm %s4095_s5, %s2240_s16  ;;  %s2082_s13 = sshll.u32 %s4008_s28, 4  ;;  %s2083_s13 = int_to_ptr.vmem [resolvable:$true] %s2082_s13 }
  0x3b   : > { %v338_v5 = vld [vmem:[#allocation5 + $0xd8] sm:$0xff]  ;;  %v335_v6 = vld [vmem:[#allocation5 + $0xc0] sm:$0xff]  ;;  %v336_v7 = vld [vmem:[#allocation5 + $0xc8] sm:$0xff]  ;;  %s2084_s12 = sshll.u32 %s2081_s6, 4  ;;  %s2070_s14 = scalar_lea.sflag [#allocation4], %s2739_s17  ;;  %s2085_s12 = int_to_ptr.hbm [resolvable:$true] %s2084_s12 }
  0x3c   : > { %350 = vmatpush.msra.mxu0 %v339_v2  ;;  %415 = vmatpush.msra.mxu1 %v340_v3  ;;  %v333_v8 = vld [vmem:[#allocation5 + $0xb0] sm:$0xff]  ;;  %v334_v9 = vld [vmem:[#allocation5 + $0xb8] sm:$0xff]  ;;  %v331_v10 = vld [vmem:[#allocation5 + $0xa0] sm:$0xff]  ;;  %s2523_s15 = sshra.s32 %s2085_s12, 4  ;;  %s2529_s8 = scalar_lea.hbm %s4095_s5, 256  ;;  %s2524_s15 = int_to_ptr.hbm [resolvable:$true] %s2523_s15 }
  0x3d   : > { %v332_v11 = vld [vmem:[#allocation5 + $0xa8] sm:$0xff]  ;;  %v329_v12 = vld [vmem:[#allocation5 + $0x90] sm:$0xff]  ;;  %v330_v13 = vld [vmem:[#allocation5 + $0x98] sm:$0xff]  ;;  %s2525_s7 = scalar_lea.hbm %s2524_s15, 128  ;;  %p2530_p11 = scmp.lt.s32.totalorder %s2524_s15, %s4095_s5 }
  0x3e   : > { %351 = vmatpush.msra.mxu0 %v337_v4  ;;  %416 = vmatpush.msra.mxu1 %v338_v5  ;;  %v327_v14 = vld [vmem:[#allocation5 + $0x80] sm:$0xff]  ;;  %v328_v15 = vld [vmem:[#allocation5 + $0x88] sm:$0xff]  ;;  %v325_v16 = vld [vmem:[#allocation5 + $0x70] sm:$0xff]  ;;  %p2526_p1 = scmp.ne.s32.totalorder %s2524_s15, %s2525_s7  ;;  %p2531_p9 = scmp.lt.s32.totalorder %s2529_s8, %s2525_s7 }
  0x3f   : > { %v326_v17 = vld [vmem:[#allocation5 + $0x78] sm:$0xff]  ;;  %v323_v18 = vld [vmem:[#allocation5 + $0x60] sm:$0xff]  ;;  %v324_v19 = vld [vmem:[#allocation5 + $0x68] sm:$0xff] }
  0x40   : > { %352 = vmatpush.msra.mxu0 %v335_v6  ;;  %417 = vmatpush.msra.mxu1 %v336_v7  ;;  %v321_v20 = vld [vmem:[#allocation5 + $0x50] sm:$0xff]  ;;  %v322_v21 = vld [vmem:[#allocation5 + $0x58] sm:$0xff]  ;;  %v319_v22 = vld [vmem:[#allocation5 + $0x40] sm:$0xff]  ;;  %p2527_p4 = pnand %p2526_p1, %p2709_p3  ;;  %p2532_p2 = por %p2531_p9, %p2530_p11 }
  0x41   : > { %v320_v23 = vld [vmem:[#allocation5 + $0x48] sm:$0xff]  ;;  %v317_v24 = vld [vmem:[#allocation5 + $0x30] sm:$0xff]  ;;  %v318_v25 = vld [vmem:[#allocation5 + $0x38] sm:$0xff] }
  0x42   : > { %353 = vmatpush.msra.mxu0 %v333_v8  ;;  %418 = vmatpush.msra.mxu1 %v334_v9  ;;  %v315_v26 = vld [vmem:[#allocation5 + $0x20] sm:$0xff]  ;;  %v316_v27 = vld [vmem:[#allocation5 + $0x28] sm:$0xff]  ;;  %v313_v28 = vld [vmem:[#allocation5 + $0x10] sm:$0xff]  ;;  %p2528_p8 = pneg %p2527_p4 }
  0x43   : > { %v314_v29 = vld [vmem:[#allocation5 + $0x18] sm:$0xff]  ;;  %v311_v30 = vld [vmem:[#allocation5] sm:$0xff]  ;;  %v312_v31 = vld [vmem:[#allocation5 + $0x8] sm:$0xff] }
  0x44   : > { %354 = vmatpush.msra.mxu0 %v331_v10  ;;  %419 = vmatpush.msra.mxu1 %v332_v11  ;;  %v295_v32 = vld [vmem:[%s2745_s11] sm:$0xff]  ;;  %v296_v33 = vld [vmem:[%s2745_s11 + $0x8] sm:$0xff]  ;;  %v297_v34 = vld [vmem:[%s2745_s11 + $0x10] sm:$0xff]  ;;  %p2533_p10 = pnand %p2532_p2, %p2528_p8 }
  0x45   : > { %v298_v35 = vld [vmem:[%s2745_s11 + $0x18] sm:$0xff]  ;;  %v299_v36 = vld [vmem:[%s2745_s11 + $0x20] sm:$0xff]  ;;  %v300_v37 = vld [vmem:[%s2745_s11 + $0x28] sm:$0xff] }
  0x46   : > { %355 = vmatpush.msra.mxu0 %v329_v12  ;;  %420 = vmatpush.msra.mxu1 %v330_v13  ;;  %v301_v38 = vld [vmem:[%s2745_s11 + $0x30] sm:$0xff]  ;;  %v302_v39 = vld [vmem:[%s2745_s11 + $0x38] sm:$0xff]  ;;  %v303_v40 = vld [vmem:[%s2745_s11 + $0x40] sm:$0xff] }
  0x47   : > { %v304_v41 = vld [vmem:[%s2745_s11 + $0x48] sm:$0xff]  ;;  %v305_v42 = vld [vmem:[%s2745_s11 + $0x50] sm:$0xff]  ;;  %v306_v43 = vld [vmem:[%s2745_s11 + $0x58] sm:$0xff] }
  0x48   : > { %356 = vmatpush.msra.mxu0 %v327_v14  ;;  %421 = vmatpush.msra.mxu1 %v328_v15  ;;  %v307_v44 = vld [vmem:[%s2745_s11 + $0x60] sm:$0xff]  ;;  %v308_v45 = vld [vmem:[%s2745_s11 + $0x68] sm:$0xff]  ;;  %v309_v46 = vld [vmem:[%s2745_s11 + $0x70] sm:$0xff] }
  0x49   : > { %v310_v47 = vld [vmem:[%s2745_s11 + $0x78] sm:$0xff]  ;;  %v343_v50 = vld [vmem:[#allocation7] sm:$0x3]  ;;  %v1900_v55 = vld [vmem:[#allocation8 + $0x68] sm:$0xff] }
  0x4a   : > { %357 = vmatpush.msra.mxu0 %v325_v16  ;;  %422 = vmatpush.msra.mxu1 %v326_v17  ;;  %v1902_v48 = vld [vmem:[#allocation8 + $0x78] sm:$0xff]  ;;  %v1901_v51 = vld [vmem:[#allocation8 + $0x70] sm:$0xff]  ;;  %v2775_v53 = vperm.slane %v343_v50, 0  ;;  %v2777_v54 = vperm.slane %v343_v50, 1  ;;  %v1916_v56 = vld [vmem:[#allocation8 + $0xe8] sm:$0xff] }
  0x4b   : > { %v1918_v49 = vld [vmem:[#allocation8 + $0xf8] sm:$0xff]  ;;  %1923 = vmatpush.msra.mxu2 %v1902_v48  ;;  %v1917_v52 = vld [vmem:[#allocation8 + $0xf0] sm:$0xff]  ;;  %v1899_v59 = vld [vmem:[#allocation8 + $0x60] sm:$0xff] }
  0x4c   : > { %358 = vmatpush.msra.mxu0 %v323_v18  ;;  %423 = vmatpush.msra.mxu1 %v324_v19  ;;  %v1915_v60 = vld [vmem:[#allocation8 + $0xe0] sm:$0xff]  ;;  %v1898_v63 = vld [vmem:[#allocation8 + $0x58] sm:$0xff]  ;;  %v1897_v5 = vld [vmem:[#allocation8 + $0x50] sm:$0xff] }
  0x4d   : > { %1988 = vmatpush.msra.mxu3 %v1918_v49  ;;  %1924 = vmatpush.msra.mxu2 %v1901_v51  ;;  %v1914_v0 = vld [vmem:[#allocation8 + $0xd8] sm:$0xff]  ;;  %v1913_v6 = vld [vmem:[#allocation8 + $0xd0] sm:$0xff]  ;;  %v1896_v8 = vld [vmem:[#allocation8 + $0x48] sm:$0xff] }
  0x4e   : > { %359 = vmatpush.msra.mxu0 %v321_v20  ;;  %424 = vmatpush.msra.mxu1 %v322_v21  ;;  %v1912_v9 = vld [vmem:[#allocation8 + $0xc8] sm:$0xff]  ;;  %v1895_v15 = vld [vmem:[#allocation8 + $0x40] sm:$0xff]  ;;  %v1894_v21 = vld [vmem:[#allocation8 + $0x38] sm:$0xff] }
  0x4f   : > { %1989 = vmatpush.msra.mxu3 %v1917_v52  ;;  %1925 = vmatpush.msra.mxu2 %v1900_v55  ;;  %v1911_v16 = vld [vmem:[#allocation8 + $0xc0] sm:$0xff]  ;;  %v1890_v50 = vld [vmem:[#allocation8 + $0x18] sm:$0xff] }
  0x50   : > { %360 = vmatpush.msra.mxu0 %v319_v22  ;;  %425 = vmatpush.msra.mxu1 %v320_v23  ;;  %v1910_v22 = vld [vmem:[#allocation8 + $0xb8] sm:$0xff] }
  0x51   : > { %1990 = vmatpush.msra.mxu3 %v1916_v56  ;;  %1926 = vmatpush.msra.mxu2 %v1899_v59  ;;  %v1906_v51 = vld [vmem:[#allocation8 + $0x98] sm:$0xff] }
  0x52   : > { %361 = vmatpush.msra.mxu0 %v317_v24  ;;  %426 = vmatpush.msra.mxu1 %v318_v25  ;;  %v1893_v24 = vld [vmem:[#allocation8 + $0x30] sm:$0xff] }
  0x53   : > { %1991 = vmatpush.msra.mxu3 %v1915_v60  ;;  %1927 = vmatpush.msra.mxu2 %v1898_v63  ;;  %v1909_v25 = vld [vmem:[#allocation8 + $0xb0] sm:$0xff] }
  0x54   : > { %362 = vmatpush.msra.mxu0 %v315_v26  ;;  %427 = vmatpush.msra.mxu1 %v316_v27  ;;  %v1889_v63 = vld [vmem:[#allocation8 + $0x10] sm:$0xff] }
  0x55   : > { %1992 = vmatpush.msra.mxu3 %v1914_v0  ;;  %1928 = vmatpush.msra.mxu2 %v1897_v5  ;;  %v1905_v5 = vld [vmem:[#allocation8 + $0x90] sm:$0xff] }
  0x56   : > { %363 = vmatpush.msra.mxu0 %v313_v28  ;;  %428 = vmatpush.msra.mxu1 %v314_v29  ;;  %v1892_v29 = vld [vmem:[#allocation8 + $0x28] sm:$0xff] }
  0x57   : > { %1993 = vmatpush.msra.mxu3 %v1913_v6  ;;  %1929 = vmatpush.msra.mxu2 %v1896_v8 }
  0x58   : > { %364 = vmatpush.msra.mxu0 %v311_v30  ;;  %429 = vmatpush.msra.mxu1 %v312_v31  ;;  %v1908_v30 = vld [vmem:[#allocation8 + $0xa8] sm:$0xff] }
  0x59   : > { %365 = vmatmul.f32.vlgmr.msra.gmra.mxu0 %v295_v32  ;;  %430 = vmatmul.f32.vlgmr.msra.gmra.mxu1 %v295_v32 }
  0x5a   : > { %1994 = vmatpush.msra.mxu3 %v1912_v9  ;;  %1930 = vmatpush.msra.mxu2 %v1895_v15 }
  0x5c   : > { %1995 = vmatpush.msra.mxu3 %v1911_v16  ;;  %1931 = vmatpush.msra.mxu2 %v1894_v21 }
  0x5e   : > { %1996 = vmatpush.msra.mxu3 %v1910_v22  ;;  %1932 = vmatpush.msra.mxu2 %v1893_v24  ;;  %v1903_v24 = vld [vmem:[#allocation8 + $0x80] sm:$0xff] }
  0x60   : > { %1997 = vmatpush.msra.mxu3 %v1909_v25  ;;  %1933 = vmatpush.msra.mxu2 %v1892_v29 }
  0x61   : > { %368 = vmatmul.f32.gmra.mxu0 %v296_v33  ;;  %433 = vmatmul.f32.gmra.mxu1 %v296_v33 }
  0x62   : > { %1998 = vmatpush.msra.mxu3 %v1908_v30 }
  0x69   : > { %371 = vmatmul.f32.gmra.mxu0 %v297_v34  ;;  %436 = vmatmul.f32.gmra.mxu1 %v297_v34 }
  0x71   : > { %374 = vmatmul.f32.gmra.mxu0 %v298_v35  ;;  %439 = vmatmul.f32.gmra.mxu1 %v298_v35 }
  0x79   : > { %377 = vmatmul.f32.gmra.mxu0 %v299_v36  ;;  %442 = vmatmul.f32.gmra.mxu1 %v299_v36 }
  0x81   : > { %380 = vmatmul.f32.gmra.mxu0 %v300_v37  ;;  %445 = vmatmul.f32.gmra.mxu1 %v300_v37 }
  0x89   : > { %383 = vmatmul.f32.gmra.mxu0 %v301_v38  ;;  %448 = vmatmul.f32.gmra.mxu1 %v301_v38 }
  0x91   : > { %386 = vmatmul.f32.gmra.mxu0 %v302_v39  ;;  %451 = vmatmul.f32.gmra.mxu1 %v302_v39 }
  0x99   : > { %389 = vmatmul.f32.gmra.mxu0 %v303_v40  ;;  %454 = vmatmul.f32.gmra.mxu1 %v303_v40  ;;  %v1891_v40 = vld [vmem:[#allocation8 + $0x20] sm:$0xff] }
  0x9a   : > { %1934 = vmatpush.msra.mxu2 %v1891_v40 }
  0x9c   : > { %1935 = vmatpush.msra.mxu2 %v1890_v50 }
  0x9e   : > { %1936 = vmatpush.msra.mxu2 %v1889_v63 }
  0xa1   : > { %392 = vmatmul.f32.gmra.mxu0 %v304_v41  ;;  %457 = vmatmul.f32.gmra.mxu1 %v304_v41  ;;  %v1907_v41 = vld [vmem:[#allocation8 + $0xa0] sm:$0xff] }
  0xa2   : > { %1999 = vmatpush.msra.mxu3 %v1907_v41 }
  0xa4   : > { %2000 = vmatpush.msra.mxu3 %v1906_v51 }
  0xa6   : > { %2001 = vmatpush.msra.mxu3 %v1905_v5 }
  0xa9   : > { %395 = vmatmul.f32.gmra.mxu0 %v305_v42  ;;  %460 = vmatmul.f32.gmra.mxu1 %v305_v42 }
  0xb1   : > { %398 = vmatmul.f32.gmra.mxu0 %v306_v43  ;;  %463 = vmatmul.f32.gmra.mxu1 %v306_v43 }
  0xb9   : > { %401 = vmatmul.f32.gmra.mxu0 %v307_v44  ;;  %466 = vmatmul.f32.gmra.mxu1 %v307_v44 }
  0xc1   : > { %404 = vmatmul.f32.gmra.mxu0 %v308_v45  ;;  %469 = vmatmul.f32.gmra.mxu1 %v308_v45 }
  0xc9   : > { %407 = vmatmul.f32.gmra.mxu0 %v309_v46  ;;  %472 = vmatmul.f32.gmra.mxu1 %v309_v46 }
  0xd1   : > { %410 = vmatmul.f32.gmra.mxu0 %v310_v47  ;;  %475 = vmatmul.f32.gmra.mxu1 %v310_v47 }
  0xd6   : > { %v366_v57 = vpop.f32.mrf.mxu0  ;;  %v431_v58 = vpop.f32.mrf.mxu1 }
  0xd7   : > { %v2780_v61 = vadd.f32 %v366_v57, %v2775_v53  ;;  %v2783_v62 = vadd.f32 %v431_v58, %v2777_v54 }
  0xd9   : > { %v2786_v1 = vmul.f32 0.70710677, %v2780_v61  ;;  %v2789_v2 = vmul.f32 0.70710677, %v2783_v62 }
  0xdb   : > { %v543_v3 = vmul.f32 %v2786_v1, %v2786_v1  ;;  %v583_v4 = vmul.f32 %v2789_v2, %v2789_v2 }
  0xdd   : > { %v2795_v7 = vmin.f32 %v543_v3, 16.0  ;;  %v2797_v12 = vmin.f32 %v583_v4, 16.0 }
  0xde   : > { %v369_v10 = vpop.f32.mrf.mxu0  ;;  %v434_v11 = vpop.f32.mrf.mxu1 }
  0xdf   : > { %v2800_v13 = vadd.f32 %v369_v10, %v2775_v53  ;;  %v2803_v14 = vadd.f32 %v434_v11, %v2777_v54  ;;  %v556_v17 = vmul.f32 3.8918573e-05, %v2795_v7  ;;  %v545_v18 = vmul.f32 2.1237322e-06, %v2795_v7  ;;  %v1888_v10 = vld [vmem:[#allocation8 + $0x8] sm:$0xff] }
  0xe0   : > { %v585_v23 = vmul.f32 2.1237322e-06, %v2797_v12  ;;  %v1904_v11 = vld [vmem:[#allocation8 + $0x88] sm:$0xff]  ;;  %1937 = vmatpush.msra.mxu2 %v1888_v10 }
  0xe1   : > { %v2808_v19 = vmul.f32 0.70710677, %v2800_v13  ;;  %v2811_v20 = vmul.f32 0.70710677, %v2803_v14  ;;  %v557_v26 = vadd.f32 0.001143296, %v556_v17  ;;  %2002 = vmatpush.msra.mxu3 %v1904_v11 }
  0xe2   : > { %v546_v36 = vadd.f32 0.00028619796, %v545_v18  ;;  %v586_v37 = vadd.f32 0.00028619796, %v585_v23  ;;  %v1887_v23 = vld [vmem:[#allocation8] sm:$0xff] }
  0xe3   : > { %v623_v27 = vmul.f32 %v2808_v19, %v2808_v19  ;;  %v663_v28 = vmul.f32 %v2811_v20, %v2811_v20  ;;  %v558_v31 = vmul.f32 %v557_v26, %v2795_v7  ;;  %1938 = vmatpush.msra.mxu2 %v1887_v23  ;;  %2003 = vmatpush.msra.mxu3 %v1903_v24 }
  0xe4   : > { %v547_v46 = vmul.f32 %v546_v36, %v2795_v7  ;;  %v587_v47 = vmul.f32 %v586_v37, %v2797_v12 }
  0xe5   : > { %v2819_v32 = vmin.f32 %v623_v27, 16.0  ;;  %v2821_v33 = vmin.f32 %v663_v28, 16.0  ;;  %v559_v44 = vadd.f32 0.014752088, %v558_v31 }
  0xe6   : > { %v372_v34 = vpop.f32.mrf.mxu0  ;;  %v437_v35 = vpop.f32.mrf.mxu1  ;;  %v548_v0 = vadd.f32 0.0036580483, %v547_v46  ;;  %v588_v3 = vadd.f32 0.0036580483, %v587_v47 }
  0xe7   : > { %v2824_v38 = vadd.f32 %v372_v34, %v2775_v53  ;;  %v2827_v39 = vadd.f32 %v437_v35, %v2777_v54  ;;  %v625_v42 = vmul.f32 2.1237322e-06, %v2819_v32  ;;  %v665_v43 = vmul.f32 2.1237322e-06, %v2821_v33 }
  0xe8   : > { %v560_v57 = vmul.f32 %v559_v44, %v2795_v7  ;;  %v549_v18 = vmul.f32 %v548_v0, %v2795_v7  ;;  %v589_v21 = vmul.f32 %v588_v3, %v2797_v12 }
  0xe9   : > { %v2832_v45 = vmul.f32 0.70710677, %v2824_v38  ;;  %v626_v48 = vadd.f32 0.00028619796, %v625_v42  ;;  %v2837_v49 = vmul.f32 0.70710677, %v2827_v39 }
  0xea   : > { %v666_v52 = vadd.f32 0.00028619796, %v665_v43  ;;  %v561_v17 = vadd.f32 0.112945676, %v560_v57  ;;  %v550_v36 = vadd.f32 0.05243302, %v549_v18 }
  0xeb   : > { %v703_v55 = vmul.f32 %v2832_v45, %v2832_v45  ;;  %v743_v56 = vmul.f32 %v2837_v49, %v2837_v49  ;;  %v627_v4 = vmul.f32 %v626_v48, %v2819_v32  ;;  %v590_v37 = vadd.f32 0.05243302, %v589_v21 }
  0xec   : > { %v667_v6 = vmul.f32 %v666_v52, %v2821_v33  ;;  %v562_v30 = vmul.f32 %v561_v17, %v2795_v7  ;;  %v2885_v52 = vmul.f32 0.5, %v2780_v61  ;;  %v596_v57 = vmul.f32 3.8918573e-05, %v2797_v12 }
  0xed   : > { %v2844_v58 = vmin.f32 %v703_v55, 16.0  ;;  %v2848_v8 = vmin.f32 %v743_v56, 16.0  ;;  %v628_v22 = vadd.f32 0.0036580483, %v627_v4  ;;  %v2888_v55 = vmul.f32 0.5, %v2783_v62 }
  0xee   : > { %v375_v59 = vpop.f32.mrf.mxu0  ;;  %v440_v60 = vpop.f32.mrf.mxu1  ;;  %v668_v25 = vadd.f32 0.0036580483, %v667_v6  ;;  %v563_v51 = vadd.f32 0.4994258, %v562_v30  ;;  %v2900_v61 = vmul.f32 0.5, %v2800_v13 }
  0xef   : > { %v2851_v9 = vadd.f32 %v375_v59, %v2775_v53  ;;  %v705_v15 = vmul.f32 2.1237322e-06, %v2844_v58  ;;  %v2855_v16 = vadd.f32 %v440_v60, %v2777_v54  ;;  %v745_v26 = vmul.f32 2.1237322e-06, %v2848_v8 }
  0xf0   : > { %v629_v42 = vmul.f32 %v628_v22, %v2819_v32  ;;  %v669_v43 = vmul.f32 %v668_v25, %v2821_v33  ;;  %v551_v59 = vmul.f32 %v550_v36, %v2795_v7  ;;  %v591_v60 = vmul.f32 %v590_v37, %v2797_v12 }
  0xf1   : > { %v2861_v27 = vmul.f32 0.70710677, %v2851_v9  ;;  %v706_v28 = vadd.f32 0.00028619796, %v705_v15  ;;  %v2864_v29 = vmul.f32 0.70710677, %v2855_v16  ;;  %v564_v11 = vmul.f32 %v563_v51, %v2795_v7 }
  0xf2   : > { %v746_v44 = vadd.f32 0.00028619796, %v745_v26  ;;  %v630_v3 = vadd.f32 0.05243302, %v629_v42  ;;  %v670_v62 = vadd.f32 0.05243302, %v669_v43 }
  0xf3   : > { %v783_v31 = vmul.f32 %v2861_v27, %v2861_v27  ;;  %v823_v40 = vmul.f32 %v2864_v29, %v2864_v29  ;;  %v707_v47 = vmul.f32 %v706_v28, %v2844_v58  ;;  %v597_v21 = vadd.f32 0.001143296, %v596_v57 }
  0xf4   : > { %v747_v4 = vmul.f32 %v746_v44, %v2848_v8  ;;  %v552_v22 = vadd.f32 0.18741608, %v551_v59  ;;  %v592_v13 = vadd.f32 0.18741608, %v591_v60  ;;  %v631_v24 = vmul.f32 %v630_v3, %v2819_v32 }
  0xf5   : > { %v2876_v46 = vmin.f32 %v783_v31, 16.0  ;;  %v2879_v48 = vmin.f32 %v823_v40, 16.0  ;;  %v708_v5 = vadd.f32 0.0036580483, %v707_v47  ;;  %v671_v31 = vmul.f32 %v670_v62, %v2821_v33 }
  0xf6   : > { %v378_v34 = vpop.f32.mrf.mxu0  ;;  %v443_v35 = vpop.f32.mrf.mxu1  ;;  %v748_v25 = vadd.f32 0.0036580483, %v747_v4  ;;  %v2919_v36 = vadd.f32 1.0, %v564_v11  ;;  %v553_v44 = vmul.f32 %v552_v22, %v2795_v7  ;;  %v2929_v47 = vmul.f32 0.5, %v2803_v14 }
  0xf7   : > { %v2872_v41 = vadd.f32 %v378_v34, %v2775_v53  ;;  %v2891_v56 = vadd.f32 %v443_v35, %v2777_v54  ;;  %v785_v63 = vmul.f32 2.1237322e-06, %v2876_v46  ;;  %v825_v6 = vmul.f32 2.1237322e-06, %v2879_v48 }
  0xf8   : > { %v709_v34 = vmul.f32 %v708_v5, %v2844_v58  ;;  %v598_v57 = vmul.f32 %v597_v21, %v2797_v12  ;;  %v632_v59 = vadd.f32 0.18741608, %v631_v24  ;;  %v749_v60 = vmul.f32 %v748_v25, %v2848_v8 }
  0xf9   : > { %v2882_v50 = vmul.f32 0.70710677, %v2872_v41  ;;  %v786_v15 = vadd.f32 0.00028619796, %v785_v63  ;;  %v2908_v17 = vmul.f32 0.70710677, %v2891_v56  ;;  %v593_v3 = vmul.f32 %v592_v13, %v2797_v12 }
  0xfa   : > { %v826_v35 = vadd.f32 0.00028619796, %v825_v6  ;;  %v672_v62 = vadd.f32 0.18741608, %v671_v31  ;;  %v710_v7 = vadd.f32 0.05243302, %v709_v34  ;;  %2325 = vrcp.f32 %v2919_v36 }
  0xfb   : > { %v863_v0 = vmul.f32 %v2882_v50, %v2882_v50  ;;  %v903_v26 = vmul.f32 %v2908_v17, %v2908_v17  ;;  %v787_v37 = vmul.f32 %v786_v15, %v2876_v46  ;;  %v554_v15 = vadd.f32 1.1283791, %v553_v44 }
  0xfc   : > { %v827_v14 = vmul.f32 %v826_v35, %v2879_v48  ;;  %v599_v21 = vadd.f32 0.014752088, %v598_v57  ;;  %v633_v22 = vmul.f32 %v632_v59, %v2819_v32  ;;  %v750_v13 = vadd.f32 0.05243302, %v749_v60 }
  0xfd   : > { %v2904_v10 = vmin.f32 %v863_v0, 16.0  ;;  %v2922_v42 = vmin.f32 %v903_v26, 16.0  ;;  %v788_v4 = vadd.f32 0.0036580483, %v787_v37  ;;  %v594_v25 = vadd.f32 1.1283791, %v593_v3 }
  0xfe   : > { %v381_v18 = vpop.f32.mrf.mxu0  ;;  %v446_v30 = vpop.f32.mrf.mxu1  ;;  %v673_v26 = vmul.f32 %v672_v62, %v2821_v33  ;;  %v2956_v34 = vmul.f32 0.5, %v2824_v38  ;;  %v828_v37 = vadd.f32 0.0036580483, %v827_v14  ;;  %v2960_v44 = vmul.f32 0.5, %v2827_v39 }
  0xff   : > { %v865_v23 = vmul.f32 2.1237322e-06, %v2904_v10  ;;  %v2915_v28 = vadd.f32 %v381_v18, %v2775_v53  ;;  %v2932_v51 = vadd.f32 %v446_v30, %v2777_v54  ;;  %v905_v63 = vmul.f32 2.1237322e-06, %v2922_v42 }
 0x100   : > { %v711_v30 = vmul.f32 %v710_v7, %v2844_v58  ;;  %v789_v35 = vmul.f32 %v788_v4, %v2876_v46  ;;  %v600_v60 = vmul.f32 %v599_v21, %v2797_v12  ;;  %v634_v3 = vadd.f32 1.1283791, %v633_v22 }
 0x101   : > { %v866_v40 = vadd.f32 0.00028619796, %v865_v23  ;;  %v2925_v43 = vmul.f32 0.70710677, %v2915_v28  ;;  %v2946_v18 = vmul.f32 0.70710677, %v2932_v51  ;;  %v751_v38 = vmul.f32 %v750_v13, %v2848_v8 }
 0x102   : > { %v906_v23 = vadd.f32 0.00028619796, %v905_v63  ;;  %v2326_v63 = vpop.eup %2325  ;;  %v2969_v7 = vmul.f32 %v594_v25, %v2789_v2  ;;  %v674_v14 = vadd.f32 1.1283791, %v673_v26  ;;  %v712_v39 = vadd.f32 0.18741608, %v711_v30 }
 0x103   : > { %v943_v0 = vmul.f32 %v2925_v43, %v2925_v43  ;;  %v867_v5 = vmul.f32 %v866_v40, %v2904_v10  ;;  %v983_v59 = vmul.f32 %v2946_v18, %v2946_v18  ;;  %v2981_v22 = vmul.f32 0.5, %v2855_v16 }
 0x104   : > { %v907_v62 = vmul.f32 %v906_v23, %v2922_v42  ;;  %v2987_v23 = vmul.f32 %v634_v3, %v2808_v19  ;;  %v2990_v25 = vmul.f32 0.5, %v2872_v41  ;;  %v2993_v30 = vmul.f32 %v674_v14, %v2811_v20 }
 0x105   : > { %v2942_v6 = vmin.f32 %v943_v0, 16.0  ;;  %v868_v40 = vadd.f32 0.0036580483, %v867_v5  ;;  %v555_v0 = vmul.f32 %v554_v15, %v2786_v1  ;;  %v790_v5 = vadd.f32 0.05243302, %v789_v35  ;;  %4110 = vst [vmem:[#allocation15_spill] sm:$0xff] %v2981_v22 }
 0x106   : > { %v384_v11 = vpop.f32.mrf.mxu0  ;;  %v567_v1 = vmul.f32 %v2326_v63, %v2919_v36  ;;  %v2978_v15 = vmul.f32 0.5, %v2851_v9  ;;  %v2984_v13 = vmin.f32 %v983_v59, 16.0  ;;  %4111 = vst [vmem:[#allocation16_spill] sm:$0xff] %v2990_v25  ;;  %v908_v26 = vadd.f32 0.0036580483, %v907_v62  ;;  %v449_v35 = vpop.f32.mrf.mxu1 }
 0x107   : > { %v945_v24 = vmul.f32 2.1237322e-06, %v2942_v6  ;;  %v2953_v31 = vadd.f32 %v384_v11, %v2775_v53  ;;  %v829_v11 = vmul.f32 %v828_v37, %v2879_v48  ;;  %v869_v21 = vmul.f32 %v868_v40, %v2904_v10 }
 0x108   : > { %v2996_v9 = vmul.f32 0.5, %v2891_v56  ;;  %v568_v37 = vsub.f32 1.0, %v567_v1  ;;  %v713_v40 = vmul.f32 %v712_v39, %v2844_v58  ;;  %v791_v19 = vmul.f32 %v790_v5, %v2876_v46 }
 0x109   : > { %v946_v57 = vadd.f32 0.00028619796, %v945_v24  ;;  %v2972_v4 = vmul.f32 0.70710677, %v2953_v31  ;;  %v752_v24 = vadd.f32 0.18741608, %v751_v38  ;;  %vm572_vm0 = vweird.f32 %v2326_v63 }
 0x10a   : > { %4112 = vst [vmem:[#allocation17_spill] sm:$0xff] %v2996_v9  ;;  %v870_v59 = vadd.f32 0.05243302, %v869_v21  ;;  %v985_v3 = vmul.f32 2.1237322e-06, %v2984_v13  ;;  %v569_v38 = vmul.f32 %v2326_v63, %v568_v37  ;;  %v909_v56 = vmul.f32 %v908_v26, %v2922_v42 }
 0x10b   : > { %v947_v2 = vmul.f32 %v946_v57, %v2942_v6  ;;  %v1023_v16 = vmul.f32 %v2972_v4, %v2972_v4  ;;  %v830_v57 = vadd.f32 0.05243302, %v829_v11  ;;  %v753_v20 = vmul.f32 %v752_v24, %v2848_v8 }
 0x10c   : > { %v3006_v62 = vadd.f32 %v449_v35, %v2777_v54  ;;  %v575_v14 = vand.u32 2147483647, %v2919_v36  ;;  %v570_v39 = vadd.f32 %v2326_v63, %v569_v38  ;;  %vm571_vm1 = vweird.f32 %v2919_v36 }
 0x10d   : > { %v948_v41 = vadd.f32 0.0036580483, %v947_v2  ;;  %v3009_v1 = vmin.f32 %v1023_v16, 16.0  ;;  %v577_v5 = vand.u32 2147483648, %v2919_v36  ;;  %v714_v11 = vadd.f32 1.1283791, %v713_v40  ;;  %vm573_vm2 = vmor %vm571_vm1, %vm572_vm0 }
 0x10e   : > { %v792_v21 = vadd.f32 0.18741608, %v791_v19  ;;  %v831_v2 = vmul.f32 %v830_v57, %v2879_v48  ;;  %v871_v24 = vmul.f32 %v870_v59, %v2904_v10  ;;  %v986_v35 = vadd.f32 0.00028619796, %v985_v3 }
 0x10f   : > { %v949_v26 = vmul.f32 %v948_v41, %v2942_v6  ;;  %v574_v37 = vsel %vm573_vm2, %v2326_v63, %v570_v39  ;;  %v578_v9 = vor.u32 1.1754944e-38, %v577_v5  ;;  %v910_v25 = vadd.f32 0.05243302, %v909_v56 }
 0x110   : > { %v3017_v16 = vmul.f32 0.5, %v2915_v28  ;;  %vm576_vm3 = vcmp.eq.f32.partialorder %v575_v14, 8.507059e+37  ;;  %v601_v38 = vadd.f32 0.112945676, %v600_v60  ;;  %v1025_v36 = vmul.f32 2.1237322e-06, %v3009_v1  ;;  %v387_v60 = vpop.f32.mrf.mxu0 }
 0x111   : > { %v3021_v40 = vmul.f32 0.70710677, %v3006_v62  ;;  %v579_v19 = vsel %vm576_vm3, %v578_v9, %v574_v37  ;;  %v636_v57 = vmul.f32 3.8918573e-05, %v2819_v32  ;;  %v754_v59 = vadd.f32 1.1283791, %v753_v20 }
 0x112   : > { %4113 = vst [vmem:[#allocation18_spill] sm:$0xff] %v3017_v16  ;;  %v832_v22 = vadd.f32 0.18741608, %v831_v2  ;;  %v580_v41 = vmul.f32 %v579_v19, %v555_v0  ;;  %v602_v63 = vmul.f32 %v601_v38, %v2797_v12  ;;  %v793_v3 = vmul.f32 %v792_v21, %v2876_v46 }
 0x113   : > { %v872_v56 = vadd.f32 0.18741608, %v871_v24  ;;  %v950_v28 = vadd.f32 0.05243302, %v949_v26  ;;  %v987_v14 = vmul.f32 %v986_v35, %v2984_v13  ;;  %v3028_v39 = vmul.f32 %v714_v11, %v2832_v45 }
 0x114   : > { %v2202_v5 = vclamps-f32 %v580_v41, 1.0  ;;  %v603_v16 = vadd.f32 0.4994258, %v602_v63  ;;  %v637_v9 = vadd.f32 0.001143296, %v636_v57  ;;  %v911_v37 = vmul.f32 %v910_v25, %v2922_v42 }
 0x115   : > { %v1026_v20 = vadd.f32 0.00028619796, %v1025_v36  ;;  %v1063_v0 = vmul.f32 %v3021_v40, %v3021_v40  ;;  %v3034_v2 = vadd.f32 %v387_v60, %v2775_v53  ;;  %v833_v21 = vmul.f32 %v832_v22, %v2879_v48  ;;  %v452_v36 = vpop.f32.mrf.mxu1 }
 0x116   : > { %v3038_v24 = vmul.f32 0.5, %v2932_v51  ;;  %v1823_v26 = vadd.f32 1.0, %v2202_v5  ;;  %v604_v45 = vmul.f32 %v603_v16, %v2797_v12  ;;  %v794_v11 = vadd.f32 1.1283791, %v793_v3 }
 0x117   : > { %v873_v35 = vmul.f32 %v872_v56, %v2904_v10  ;;  %v951_v25 = vmul.f32 %v950_v28, %v2942_v6  ;;  %v988_v38 = vadd.f32 0.0036580483, %v987_v14  ;;  %v638_v41 = vmul.f32 %v637_v9, %v2819_v32 }
 0x118   : > { %4114 = vst [vmem:[#allocation19_spill] sm:$0xff] %v3038_v24  ;;  %v1855_v19 = vmul.f32 %v1823_v26, %v2885_v52  ;;  %v3044_v57 = vadd.f32 1.0, %v604_v45  ;;  %v676_v22 = vmul.f32 3.8918573e-05, %v2821_v33  ;;  %v912_v51 = vadd.f32 0.18741608, %v911_v37 }
 0x119   : > { %v1027_v63 = vmul.f32 %v1026_v20, %v3009_v1  ;;  %v3049_v60 = vmin.f32 %v1063_v0, 16.0  ;;  %v3052_v12 = vmul.f32 0.70710677, %v3034_v2  ;;  %v3055_v16 = vmul.f32 %v754_v59, %v2837_v49 }
 0x11a   : > { %v3058_v3 = vmul.f32 0.5, %v2953_v31  ;;  %1939 = vmatmul.f32.vlgmr.msra.gmra.mxu2 %v1855_v19  ;;  %2327 = vrcp.f32 %v3044_v57  ;;  %v3062_v52 = vadd.f32 %v452_v36, %v2777_v54  ;;  %v834_v56 = vadd.f32 1.1283791, %v833_v21 }
 0x11b   : > { %v952_v28 = vadd.f32 0.18741608, %v951_v25  ;;  %v989_v14 = vmul.f32 %v988_v38, %v2984_v13  ;;  %v3066_v5 = vmul.f32 0.5, %v3006_v62  ;;  %v3069_v9 = vmul.f32 %v794_v11, %v2861_v27 }
 0x11c   : > { %4115 = vst [vmem:[#allocation20_spill] sm:$0xff] %v3058_v3  ;;  %v874_v49 = vadd.f32 1.1283791, %v873_v35  ;;  %v639_v59 = vadd.f32 0.014752088, %v638_v41  ;;  %v913_v37 = vmul.f32 %v912_v51, %v2922_v42  ;;  %v1103_v21 = vmul.f32 %v3052_v12, %v3052_v12 }
 0x11d   : > { %4116 = vst [vmem:[#allocation21_spill] sm:$0xff] %v3066_v5  ;;  %v677_v31 = vadd.f32 0.001143296, %v676_v22  ;;  %v1028_v20 = vadd.f32 0.0036580483, %v1027_v63  ;;  %v3082_v11 = vmul.f32 %v834_v56, %v2864_v29  ;;  %v953_v35 = vmul.f32 %v952_v28, %v2942_v6 }
 0x11e   : > { %v1065_v0 = vmul.f32 2.1237322e-06, %v3049_v60  ;;  %v3076_v26 = vmul.f32 0.70710677, %v3062_v52  ;;  %v640_v62 = vmul.f32 %v639_v59, %v2819_v32  ;;  %v716_v27 = vmul.f32 3.8918573e-05, %v2844_v58 }
 0x11f   : > { %v678_v45 = vmul.f32 %v677_v31, %v2821_v33  ;;  %v990_v25 = vadd.f32 0.05243302, %v989_v14  ;;  %v756_v38 = vmul.f32 3.8918573e-05, %v2848_v8  ;;  %v3087_v19 = vmul.f32 %v874_v49, %v2882_v50 }
 0x120   : > { %4117 = vst [vmem:[#allocation22_spill] sm:$0xff] %v3076_v26  ;;  %v2328_v36 = vpop.eup %2327  ;;  %v641_v41 = vadd.f32 0.112945676, %v640_v62  ;;  %v717_v51 = vadd.f32 0.001143296, %v716_v27  ;;  %v1029_v59 = vmul.f32 %v1028_v20, %v3009_v1  ;;  %v3091_v29 = vmin.f32 %v1103_v21, 16.0 }
 0x121   : > { %4118 = vst [vmem:[#allocation23_spill] sm:$0xff] %v3087_v19  ;;  %v679_v22 = vadd.f32 0.014752088, %v678_v45  ;;  %v914_v63 = vadd.f32 1.1283791, %v913_v37  ;;  %v607_v5 = vmul.f32 %v2328_v36, %v3044_v57  ;;  %v1143_v56 = vmul.f32 %v3076_v26, %v3076_v26 }
 0x122   : > { %v1066_v31 = vadd.f32 0.00028619796, %v1065_v0  ;;  %v642_v28 = vmul.f32 %v641_v41, %v2819_v32  ;;  %v954_v50 = vadd.f32 1.1283791, %v953_v35  ;;  %v718_v62 = vmul.f32 %v717_v51, %v2844_v58 }
 0x123   : > { %v680_v14 = vmul.f32 %v679_v22, %v2821_v33  ;;  %v608_v49 = vsub.f32 1.0, %v607_v5  ;;  %v757_v45 = vadd.f32 0.001143296, %v756_v38  ;;  %v991_v37 = vmul.f32 %v990_v25, %v2984_v13 }
 0x124   : > { %v617_v20 = vand.u32 2147483648, %v3044_v57  ;;  %v643_v0 = vadd.f32 0.4994258, %v642_v28  ;;  %v1030_v21 = vadd.f32 0.05243302, %v1029_v59  ;;  %vm612_vm4 = vweird.f32 %v2328_v36 }
 0x125   : > { %v681_v27 = vadd.f32 0.112945676, %v680_v14  ;;  %v609_v3 = vmul.f32 %v2328_v36, %v608_v49  ;;  %v615_v24 = vand.u32 2147483647, %v3044_v57  ;;  %v1105_v41 = vmul.f32 2.1237322e-06, %v3091_v29 }
 0x126   : > { %v3102_v19 = vmin.f32 %v1143_v56, 16.0  ;;  %v644_v5 = vmul.f32 %v643_v0, %v2819_v32  ;;  %vm611_vm5 = vweird.f32 %v3044_v57  ;;  %v719_v25 = vadd.f32 0.014752088, %v718_v62  ;;  %v390_v32 = vpop.f32.mrf.mxu0  ;;  %v455_v62 = vpop.f32.mrf.mxu1 }
 0x127   : > { %v682_v35 = vmul.f32 %v681_v27, %v2821_v33  ;;  %v610_v38 = vadd.f32 %v2328_v36, %v609_v3  ;;  %v758_v22 = vmul.f32 %v757_v45, %v2848_v8  ;;  %vm613_vm6 = vmor %vm611_vm5, %vm612_vm4  ;;  %v618_v51 = vor.u32 1.1754944e-38, %v617_v20 }
 0x128   : > { %v3108_v59 = vadd.f32 1.0, %v644_v5  ;;  %v796_v14 = vmul.f32 3.8918573e-05, %v2876_v46  ;;  %v992_v49 = vadd.f32 0.18741608, %v991_v37  ;;  %v1067_v56 = vmul.f32 %v1066_v31, %v3049_v60 }
 0x129   : > { %v683_v28 = vadd.f32 0.4994258, %v682_v35  ;;  %v614_v26 = vsel %vm613_vm6, %v2328_v36, %v610_v38  ;;  %vm616_vm7 = vcmp.eq.f32.partialorder %v615_v24, 8.507059e+37  ;;  %v1106_v3 = vadd.f32 0.00028619796, %v1105_v41 }
 0x12a   : > { %v619_v0 = vsel %vm616_vm7, %v618_v51, %v614_v26  ;;  %v1145_v57 = vmul.f32 2.1237322e-06, %v3102_v19  ;;  %2329 = vrcp.f32 %v3108_v59  ;;  %v1031_v45 = vmul.f32 %v1030_v21, %v3009_v1 }
 0x12b   : > { %v620_v20 = vmul.f32 %v619_v0, %v2969_v7  ;;  %v720_v27 = vmul.f32 %v719_v25, %v2844_v58  ;;  %v759_v5 = vadd.f32 0.014752088, %v758_v22  ;;  %v684_v37 = vmul.f32 %v683_v28, %v2821_v33 }
 0x12c   : > { %v3119_v36 = vadd.f32 %v390_v32, %v2775_v53  ;;  %v3122_v24 = vadd.f32 %v455_v62, %v2777_v54  ;;  %v797_v26 = vadd.f32 0.001143296, %v796_v14  ;;  %v3125_v31 = vmul.f32 %v914_v63, %v2908_v17 }
 0x12d   : > { %v993_v41 = vmul.f32 %v992_v49, %v2984_v13  ;;  %v1068_v21 = vadd.f32 0.0036580483, %v1067_v56  ;;  %v2203_v35 = vclamps-f32 %v620_v20, 1.0  ;;  %v1107_v7 = vmul.f32 %v1106_v3, %v3091_v29 }
 0x12e   : > { %v1146_v38 = vadd.f32 0.00028619796, %v1145_v57  ;;  %v3129_v25 = vadd.f32 1.0, %v684_v37  ;;  %v3132_v33 = vmul.f32 0.70710677, %v3119_v36  ;;  %v3135_v22 = vmul.f32 %v954_v50, %v2925_v43 }
 0x12f   : > { %v1824_v51 = vadd.f32 1.0, %v2203_v35  ;;  %v721_v28 = vadd.f32 0.112945676, %v720_v27  ;;  %v760_v17 = vmul.f32 %v759_v5, %v2848_v8  ;;  %v1032_v14 = vadd.f32 0.18741608, %v1031_v45 }
 0x130   : > { %v2330_v63 = vpop.eup %2329  ;;  %2331 = vrcp.f32 %v3129_v25  ;;  %v3140_v49 = vmul.f32 0.70710677, %v3122_v24  ;;  %v798_v56 = vmul.f32 %v797_v26, %v2876_v46  ;;  %v3143_v32 = vadd.f32 1.1283791, %v993_v41 }
 0x131   : > { %v1069_v0 = vmul.f32 %v1068_v21, %v3049_v60  ;;  %v1856_v43 = vmul.f32 %v1824_v51, %v2888_v55  ;;  %v647_v50 = vmul.f32 %v2330_v63, %v3108_v59  ;;  %v3149_v3 = vmul.f32 0.5, %v3034_v2 }
 0x132   : > { %v1108_v57 = vadd.f32 0.0036580483, %v1107_v7  ;;  %v1147_v62 = vmul.f32 %v1146_v38, %v3102_v19  ;;  %v1183_v45 = vmul.f32 %v3132_v33, %v3132_v33  ;;  %v655_v27 = vand.u32 2147483647, %v3108_v59 }
 0x133   : > { %4119 = vst [vmem:[#allocation24_spill] sm:$0xff] %v3149_v3  ;;  %2004 = vmatmul.f32.vlgmr.msra.gmra.mxu3 %v1856_v43  ;;  %v648_v20 = vsub.f32 1.0, %v647_v50  ;;  %v722_v5 = vmul.f32 %v721_v28, %v2844_v58  ;;  %v761_v37 = vadd.f32 0.112945676, %v760_v17  ;;  %v1033_v55 = vmul.f32 %v1032_v14, %v3009_v1 }
 0x134   : > { %v657_v26 = vand.u32 2147483648, %v3108_v59  ;;  %v1223_v2 = vmul.f32 %v3140_v49, %v3140_v49  ;;  %v799_v41 = vadd.f32 0.014752088, %v798_v56  ;;  %vm652_vm8 = vweird.f32 %v2330_v63 }
 0x135   : > { %v649_v21 = vmul.f32 %v2330_v63, %v648_v20  ;;  %v723_v35 = vadd.f32 0.4994258, %v722_v5  ;;  %v762_v7 = vmul.f32 %v761_v37, %v2848_v8  ;;  %v1070_v51 = vadd.f32 0.05243302, %v1069_v0 }
 0x136   : > { %v2332_v38 = vpop.eup %2331  ;;  %v1109_v43 = vmul.f32 %v1108_v57, %v3091_v29  ;;  %v1148_v50 = vadd.f32 0.0036580483, %v1147_v62  ;;  %v3162_v28 = vmin.f32 %v1183_v45, 16.0  ;;  %vm651_vm9 = vweird.f32 %v3108_v59 }
 0x137   : > { %v650_v17 = vadd.f32 %v2330_v63, %v649_v21  ;;  %vm656_vm10 = vcmp.eq.f32.partialorder %v655_v27, 8.507059e+37  ;;  %v687_v14 = vmul.f32 %v2332_v38, %v3129_v25  ;;  %vm653_vm11 = vmor %vm651_vm9, %vm652_vm8  ;;  %v658_v56 = vor.u32 1.1754944e-38, %v657_v26 }
 0x138   : > { %v3166_v20 = vmin.f32 %v1223_v2, 16.0  ;;  %v724_v5 = vmul.f32 %v723_v35, %v2844_v58  ;;  %v763_v37 = vadd.f32 0.4994258, %v762_v7  ;;  %v697_v57 = vand.u32 2147483648, %v3129_v25 }
 0x139   : > { %v654_v3 = vsel %vm653_vm11, %v2330_v63, %v650_v17  ;;  %v688_v0 = vsub.f32 1.0, %v687_v14  ;;  %v800_v62 = vmul.f32 %v799_v41, %v2876_v46  ;;  %v1185_v21 = vmul.f32 2.1237322e-06, %v3162_v28 }
 0x13a   : > { %v659_v45 = vsel %vm656_vm10, %v658_v56, %v654_v3  ;;  %v3172_v59 = vadd.f32 1.0, %v724_v5  ;;  %v764_v27 = vmul.f32 %v763_v37, %v2848_v8  ;;  %vm692_vm12 = vweird.f32 %v2332_v38 }
 0x13b   : > { %v660_v26 = vmul.f32 %v659_v45, %v2987_v23  ;;  %v689_v2 = vmul.f32 %v2332_v38, %v688_v0  ;;  %v695_v58 = vand.u32 2147483647, %v3129_v25  ;;  %v1071_v63 = vmul.f32 %v1070_v51, %v3049_v60 }
 0x13c   : > { %v1110_v35 = vadd.f32 0.05243302, %v1109_v43  ;;  %v1225_v7 = vmul.f32 2.1237322e-06, %v3166_v20  ;;  %2333 = vrcp.f32 %v3172_v59  ;;  %v1149_v3 = vmul.f32 %v1148_v50, %v3102_v19 }
 0x13d   : > { %v2204_v41 = vclamps-f32 %v660_v26, 1.0  ;;  %v690_v17 = vadd.f32 %v2332_v38, %v689_v2  ;;  %vm691_vm13 = vweird.f32 %v3129_v25  ;;  %v698_v8 = vor.u32 1.1754944e-38, %v697_v57 }
 0x13e   : > { %vm693_vm14 = vmor %vm691_vm13, %vm692_vm12  ;;  %v1186_v23 = vadd.f32 0.00028619796, %v1185_v21  ;;  %v3182_v14 = vadd.f32 1.0, %v764_v27  ;;  %v801_v56 = vadd.f32 0.112945676, %v800_v62  ;;  %vm696_vm15 = vcmp.eq.f32.partialorder %v695_v58, 8.507059e+37  ;;  %v393_v62 = vpop.f32.mrf.mxu0 }
 0x13f   : > { %v1034_v5 = vadd.f32 1.1283791, %v1033_v55  ;;  %v1825_v37 = vadd.f32 1.0, %v2204_v41  ;;  %v694_v51 = vsel %vm693_vm14, %v2332_v38, %v690_v17  ;;  %v1072_v43 = vadd.f32 0.18741608, %v1071_v63 }
 0x140   : > { %v699_v0 = vsel %vm696_vm15, %v698_v8, %v694_v51  ;;  %v1226_v45 = vadd.f32 0.00028619796, %v1225_v7  ;;  %2335 = vrcp.f32 %v3182_v14  ;;  %v3187_v50 = vmul.f32 %v3143_v32, %v2946_v18 }
 0x141   : > { %v1111_v25 = vmul.f32 %v1110_v35, %v3091_v29  ;;  %v1857_v57 = vmul.f32 %v1825_v37, %v2900_v61  ;;  %v700_v21 = vmul.f32 %v699_v0, %v2993_v30  ;;  %v1150_v27 = vadd.f32 0.05243302, %v1149_v3  ;;  %v458_v0 = vpop.f32.mrf.mxu1 }
 0x142   : > { %v2334_v55 = vpop.eup %2333  ;;  %v1187_v38 = vmul.f32 %v1186_v23, %v3162_v28  ;;  %v802_v26 = vmul.f32 %v801_v56, %v2876_v46  ;;  %v836_v2 = vmul.f32 3.8918573e-05, %v2879_v48  ;;  %v3196_v58 = vmul.f32 %v1034_v5, %v2972_v4 }
 0x143   : > { %v3199_v18 = vmul.f32 0.5, %v3062_v52  ;;  %1942 = vmatmul.f32.gmra.mxu2 %v1857_v57  ;;  %v2205_v32 = vclamps-f32 %v700_v21, 1.0  ;;  %v727_v61 = vmul.f32 %v2334_v55, %v3172_v59  ;;  %v1073_v30 = vmul.f32 %v1072_v43, %v3049_v60 }
 0x144   : > { %v1227_v63 = vmul.f32 %v1226_v45, %v3166_v20  ;;  %v735_v35 = vand.u32 2147483647, %v3172_v59  ;;  %v3206_v7 = vadd.f32 %v393_v62, %v2775_v53  ;;  %v1112_v3 = vadd.f32 0.18741608, %v1111_v25 }
 0x145   : > { %v1826_v41 = vadd.f32 1.0, %v2205_v32  ;;  %v728_v4 = vsub.f32 1.0, %v727_v61  ;;  %v737_v17 = vand.u32 2147483648, %v3172_v59  ;;  %v1151_v8 = vmul.f32 %v1150_v27, %v3102_v19 }
 0x146   : > { %v2336_v52 = vpop.eup %2335  ;;  %v1188_v23 = vadd.f32 0.0036580483, %v1187_v38  ;;  %v803_v56 = vadd.f32 0.4994258, %v802_v26  ;;  %v837_v5 = vadd.f32 0.001143296, %v836_v2  ;;  %vm732_vm0 = vweird.f32 %v2334_v55 }
 0x147   : > { %v1858_v37 = vmul.f32 %v1826_v41, %v2929_v47  ;;  %v729_v51 = vmul.f32 %v2334_v55, %v728_v4  ;;  %v767_v43 = vmul.f32 %v2336_v52, %v3182_v14  ;;  %v1228_v45 = vadd.f32 0.0036580483, %v1227_v63 }
 0x148   : > { %vm731_vm1 = vweird.f32 %v3172_v59  ;;  %vm3213_vm2 = vcmp.eq.f32.partialorder %v735_v35, 8.507059e+37  ;;  %v3218_v57 = vmul.f32 0.70710677, %v3206_v7  ;;  %v738_v62 = vor.u32 1.1754944e-38, %v737_v17 }
 0x149   : > { %2007 = vmatmul.f32.gmra.mxu3 %v1858_v37  ;;  %v730_v21 = vadd.f32 %v2334_v55, %v729_v51  ;;  %v768_v27 = vsub.f32 1.0, %v767_v43  ;;  %v804_v47 = vmul.f32 %v803_v56, %v2876_v46  ;;  %vm733_vm3 = vmor %vm731_vm1, %vm732_vm0  ;;  %v775_v38 = vand.u32 2147483647, %v3182_v14 }
 0x14a   : > { %v777_v26 = vand.u32 2147483648, %v3182_v14  ;;  %v3224_v59 = vadd.f32 %v458_v0, %v2777_v54  ;;  %v838_v2 = vmul.f32 %v837_v5, %v2879_v48  ;;  %vm772_vm4 = vweird.f32 %v2336_v52 }
 0x14b   : > { %v734_v32 = vsel %vm733_vm3, %v2334_v55, %v730_v21  ;;  %v769_v61 = vmul.f32 %v2336_v52, %v768_v27  ;;  %v3227_v63 = vadd.f32 1.0, %v804_v47  ;;  %v1189_v35 = vmul.f32 %v1188_v23, %v3162_v28 }
 0x14c   : > { %v739_v46 = vsel %vm3213_vm2, %v738_v62, %v734_v32  ;;  %v1263_v41 = vmul.f32 %v3218_v57, %v3218_v57  ;;  %v839_v4 = vadd.f32 0.014752088, %v838_v2  ;;  %vm771_vm5 = vweird.f32 %v3182_v14 }
 0x14d   : > { %v740_v17 = vmul.f32 %v739_v46, %v3028_v39  ;;  %v770_v56 = vadd.f32 %v2336_v52, %v769_v61  ;;  %2337 = vrcp.f32 %v3227_v63  ;;  %v1152_v55 = vadd.f32 0.18741608, %v1151_v8  ;;  %vm773_vm6 = vmor %vm771_vm5, %vm772_vm4 }
 0x14e   : > { %v778_v5 = vor.u32 1.1754944e-38, %v777_v26  ;;  %v3238_v37 = vmul.f32 0.70710677, %v3224_v59  ;;  %v840_v23 = vmul.f32 %v839_v4, %v2879_v48  ;;  %vm776_vm7 = vcmp.eq.f32.partialorder %v775_v38, 8.507059e+37  ;;  %v461_v4 = vpop.f32.mrf.mxu1 }
 0x14f   : > { %v2206_v51 = vclamps-f32 %v740_v17, 1.0  ;;  %v774_v43 = vsel %vm773_vm6, %v2336_v52, %v770_v56  ;;  %v876_v0 = vmul.f32 3.8918573e-05, %v2904_v10  ;;  %v1190_v25 = vadd.f32 0.05243302, %v1189_v35 }
 0x150   : > { %v1229_v39 = vmul.f32 %v1228_v45, %v3166_v20  ;;  %v779_v21 = vsel %vm776_vm7, %v778_v5, %v774_v43  ;;  %v3243_v14 = vmin.f32 %v1263_v41, 16.0  ;;  %v3245_v62 = vadd.f32 1.1283791, %v1073_v30  ;;  %v396_v41 = vpop.f32.mrf.mxu0 }
 0x151   : > { %v1827_v8 = vadd.f32 1.0, %v2206_v51  ;;  %v780_v27 = vmul.f32 %v779_v21, %v3055_v16  ;;  %v841_v47 = vadd.f32 0.112945676, %v840_v23  ;;  %v1113_v26 = vmul.f32 %v1112_v3, %v3091_v29 }
 0x152   : > { %v3250_v2 = vmul.f32 0.5, %v3119_v36  ;;  %v1303_v52 = vmul.f32 %v3238_v37, %v3238_v37  ;;  %v877_v38 = vadd.f32 0.001143296, %v876_v0  ;;  %v1153_v45 = vmul.f32 %v1152_v55, %v3102_v19 }
 0x153   : > { %v2338_v32 = vpop.eup %2337  ;;  %v1859_v61 = vmul.f32 %v1827_v8, %v2956_v34  ;;  %v2207_v30 = vclamps-f32 %v780_v27, 1.0  ;;  %v842_v35 = vmul.f32 %v841_v47, %v2879_v48  ;;  %v1191_v16 = vmul.f32 %v1190_v25, %v3162_v28 }
 0x154   : > { %4122 = vst [vmem:[#allocation25_spill] sm:$0xff] %v3250_v2  ;;  %v1230_v46 = vadd.f32 0.05243302, %v1229_v39  ;;  %v1265_v3 = vmul.f32 2.1237322e-06, %v3243_v14  ;;  %v807_v36 = vmul.f32 %v2338_v32, %v3227_v63  ;;  %v3261_v5 = vadd.f32 %v396_v41, %v2775_v53 }
 0x155   : > { %1945 = vmatmul.f32.gmra.mxu2 %v1859_v61  ;;  %v1828_v17 = vadd.f32 1.0, %v2207_v30  ;;  %v843_v56 = vadd.f32 0.4994258, %v842_v35  ;;  %v3264_v34 = vadd.f32 %v461_v4, %v2777_v54  ;;  %v3266_v55 = vmin.f32 %v1303_v52, 16.0 }
 0x156   : > { %v808_v23 = vsub.f32 1.0, %v807_v36  ;;  %v817_v51 = vand.u32 2147483648, %v3227_v63  ;;  %v878_v43 = vmul.f32 %v877_v38, %v2904_v10  ;;  %v3273_v39 = vmul.f32 0.70710677, %v3261_v5 }
 0x157   : > { %v1860_v0 = vmul.f32 %v1828_v17, %v2960_v44  ;;  %v844_v25 = vmul.f32 %v843_v56, %v2879_v48  ;;  %v916_v21 = vmul.f32 3.8918573e-05, %v2922_v42  ;;  %v1231_v8 = vmul.f32 %v1230_v46, %v3166_v20 }
 0x158   : > { %v809_v27 = vmul.f32 %v2338_v32, %v808_v23  ;;  %vm812_vm8 = vweird.f32 %v2338_v32  ;;  %v815_v47 = vand.u32 2147483647, %v3227_v63  ;;  %v1266_v52 = vadd.f32 0.00028619796, %v1265_v3 }
 0x159   : > { %2010 = vmatmul.f32.gmra.mxu3 %v1860_v0  ;;  %v3278_v61 = vadd.f32 1.0, %v844_v25  ;;  %v1343_v44 = vmul.f32 %v3273_v39, %v3273_v39  ;;  %v3283_v48 = vmul.f32 0.70710677, %v3264_v34  ;;  %v1305_v38 = vmul.f32 2.1237322e-06, %v3266_v55 }
 0x15a   : > { %v810_v30 = vadd.f32 %v2338_v32, %v809_v27  ;;  %vm811_vm9 = vweird.f32 %v3227_v63  ;;  %v879_v35 = vadd.f32 0.014752088, %v878_v43  ;;  %v3287_v46 = vadd.f32 1.1283791, %v1113_v26 }
 0x15b   : > { %vm813_vm10 = vmor %vm811_vm9, %vm812_vm8  ;;  %v818_v36 = vor.u32 1.1754944e-38, %v817_v51  ;;  %2339 = vrcp.f32 %v3278_v61  ;;  %v917_v3 = vadd.f32 0.001143296, %v916_v21  ;;  %v3290_v41 = vadd.f32 1.1283791, %v1153_v45 }
 0x15c   : > { %v814_v4 = vsel %vm813_vm10, %v2338_v32, %v810_v30  ;;  %vm816_vm11 = vcmp.eq.f32.partialorder %v815_v47, 8.507059e+37  ;;  %v3292_v17 = vmin.f32 %v1343_v44, 16.0  ;;  %v1192_v56 = vadd.f32 0.18741608, %v1191_v16 }
 0x15d   : > { %v1267_v23 = vmul.f32 %v1266_v52, %v3243_v14  ;;  %v819_v0 = vsel %vm816_vm11, %v818_v36, %v814_v4  ;;  %v1383_v63 = vmul.f32 %v3283_v48, %v3283_v48  ;;  %v1232_v26 = vadd.f32 0.18741608, %v1231_v8 }
 0x15e   : > { %v1306_v43 = vadd.f32 0.00028619796, %v1305_v38  ;;  %v820_v51 = vmul.f32 %v819_v0, %v3069_v9  ;;  %v880_v25 = vmul.f32 %v879_v35, %v2904_v10  ;;  %v1345_v45 = vmul.f32 2.1237322e-06, %v3292_v17 }
 0x15f   : > { %v3300_v21 = vmin.f32 %v1383_v63, 16.0  ;;  %v918_v32 = vmul.f32 %v917_v3, %v2922_v42  ;;  %v956_v16 = vmul.f32 3.8918573e-05, %v2942_v6  ;;  %v3305_v27 = vmul.f32 0.5, %v3122_v24 }
 0x160   : > { %v2208_v47 = vclamps-f32 %v820_v51, 1.0  ;;  %v881_v52 = vadd.f32 0.112945676, %v880_v25  ;;  %v996_v8 = vmul.f32 3.8918573e-05, %v2984_v13  ;;  %v3310_v9 = vmul.f32 %v3245_v62, %v3021_v40 }
 0x161   : > { %4123 = vst [vmem:[#allocation26_spill] sm:$0xff] %v3305_v27  ;;  %v2340_v44 = vpop.eup %2339  ;;  %v1268_v38 = vadd.f32 0.0036580483, %v1267_v23  ;;  %v919_v30 = vadd.f32 0.014752088, %v918_v32  ;;  %v1193_v36 = vmul.f32 %v1192_v56, %v3162_v28  ;;  %v1307_v3 = vmul.f32 %v1306_v43, %v3266_v55 }
 0x162   : > { %v957_v35 = vadd.f32 0.001143296, %v956_v16  ;;  %v1829_v4 = vadd.f32 1.0, %v2208_v47  ;;  %v847_v24 = vmul.f32 %v2340_v44, %v3278_v61  ;;  %v1346_v0 = vadd.f32 0.00028619796, %v1345_v45 }
 0x163   : > { %v1385_v63 = vmul.f32 2.1237322e-06, %v3300_v21  ;;  %v882_v51 = vmul.f32 %v881_v52, %v2904_v10  ;;  %v920_v25 = vmul.f32 %v919_v30, %v2922_v42  ;;  %v997_v32 = vadd.f32 0.001143296, %v996_v8 }
 0x164   : > { %v1861_v40 = vmul.f32 %v1829_v4, %v2978_v15  ;;  %v848_v62 = vsub.f32 1.0, %v847_v24  ;;  %v958_v23 = vmul.f32 %v957_v35, %v2942_v6  ;;  %v1269_v56 = vmul.f32 %v1268_v38, %v3243_v14 }
 0x165   : > { %v857_v43 = vand.u32 2147483648, %v3278_v61  ;;  %v883_v16 = vadd.f32 0.4994258, %v882_v51  ;;  %v921_v47 = vadd.f32 0.112945676, %v920_v25  ;;  %vm852_vm12 = vweird.f32 %v2340_v44 }
 0x166   : > { %v1308_v27 = vadd.f32 0.0036580483, %v1307_v3  ;;  %1948 = vmatmul.f32.gmra.mxu2 %v1861_v40  ;;  %v849_v45 = vmul.f32 %v2340_v44, %v848_v62  ;;  %v855_v52 = vand.u32 2147483647, %v3278_v61  ;;  %v1347_v30 = vmul.f32 %v1346_v0, %v3292_v17 }
 0x167   : > { %v1386_v2 = vadd.f32 0.00028619796, %v1385_v63  ;;  %v884_v15 = vmul.f32 %v883_v16, %v2904_v10  ;;  %v922_v35 = vmul.f32 %v921_v47, %v2922_v42  ;;  %vm851_vm13 = vweird.f32 %v3278_v61 }
 0x168   : > { %v850_v8 = vadd.f32 %v2340_v44, %v849_v45  ;;  %v959_v38 = vadd.f32 0.014752088, %v958_v23  ;;  %v998_v4 = vmul.f32 %v997_v32, %v2984_v13  ;;  %v1270_v24 = vadd.f32 0.05243302, %v1269_v56  ;;  %vm853_vm14 = vmor %vm851_vm13, %vm852_vm12 }
 0x169   : > { %v858_v3 = vor.u32 1.1754944e-38, %v857_v43  ;;  %v3328_v51 = vadd.f32 1.0, %v884_v15  ;;  %v923_v25 = vadd.f32 0.4994258, %v922_v35  ;;  %v1233_v40 = vmul.f32 %v1232_v26, %v3166_v20  ;;  %v4124_v26 = vld [vmem:[#allocation22_spill] sm:$0xff] }
 0x16a   : > { %v1309_v0 = vmul.f32 %v1308_v27, %v3266_v55  ;;  %v854_v63 = vsel %vm853_vm14, %v2340_v44, %v850_v8  ;;  %vm856_vm15 = vcmp.eq.f32.partialorder %v855_v52, 8.507059e+37  ;;  %v1348_v62 = vadd.f32 0.0036580483, %v1347_v30  ;;  %v399_v52 = vpop.f32.mrf.mxu0 }
 0x16b   : > { %v859_v10 = vsel %vm856_vm15, %v858_v3, %v854_v63  ;;  %v1387_v16 = vmul.f32 %v1386_v2, %v3300_v21  ;;  %2341 = vrcp.f32 %v3328_v51  ;;  %v3336_v61 = vmul.f32 %v3287_v46, %v3052_v12  ;;  %v464_v63 = vpop.f32.mrf.mxu1 }
 0x16c   : > { %v860_v23 = vmul.f32 %v859_v10, %v3082_v11  ;;  %v960_v32 = vmul.f32 %v959_v38, %v2942_v6  ;;  %v999_v56 = vadd.f32 0.014752088, %v998_v4  ;;  %v3342_v27 = vmul.f32 %v3290_v41, %v4124_v26 }
 0x16d   : > { %v1194_v44 = vadd.f32 1.1283791, %v1193_v36  ;;  %v1271_v43 = vmul.f32 %v1270_v24, %v3243_v14  ;;  %v924_v2 = vmul.f32 %v923_v25, %v2922_v42  ;;  %v1234_v47 = vadd.f32 1.1283791, %v1233_v40  ;;  %v4127_v25 = vld [vmem:[#allocation15_spill] sm:$0xff] }
 0x16e   : > { %v3347_v45 = vmul.f32 0.5, %v3206_v7  ;;  %v1310_v12 = vadd.f32 0.05243302, %v1309_v0  ;;  %v2209_v46 = vclamps-f32 %v860_v23, 1.0  ;;  %v1349_v11 = vmul.f32 %v1348_v62, %v3292_v17 }
 0x16f   : > { %v1388_v30 = vadd.f32 0.0036580483, %v1387_v16  ;;  %v3350_v15 = vadd.f32 1.0, %v924_v2  ;;  %v1036_v41 = vmul.f32 3.8918573e-05, %v3009_v1  ;;  %v3354_v36 = vmul.f32 0.5, %v3224_v59 }
 0x170   : > { %4125 = vst [vmem:[#allocation22_spill] sm:$0xff] %v3347_v45  ;;  %v1830_v35 = vadd.f32 1.0, %v2209_v46  ;;  %v961_v8 = vadd.f32 0.112945676, %v960_v32  ;;  %v1000_v42 = vmul.f32 %v999_v56, %v2984_v13  ;;  %v3358_v7 = vmul.f32 %v1194_v44, %v3132_v33 }
 0x171   : > { %4126 = vst [vmem:[#allocation27_spill] sm:$0xff] %v3354_v36  ;;  %v2342_v38 = vpop.eup %2341  ;;  %v1272_v4 = vadd.f32 0.18741608, %v1271_v43  ;;  %2343 = vrcp.f32 %v3350_v15  ;;  %v3362_v24 = vadd.f32 %v399_v52, %v2775_v53  ;;  %v3365_v3 = vmul.f32 %v1234_v47, %v3140_v49 }
 0x172   : > { %v1862_v59 = vmul.f32 %v1830_v35, %v4127_v25  ;;  %v3369_v40 = vmul.f32 0.5, %v3261_v5  ;;  %v887_v0 = vmul.f32 %v2342_v38, %v3328_v51  ;;  %v1311_v33 = vmul.f32 %v1310_v12, %v3266_v55 }
 0x173   : > { %v1350_v10 = vadd.f32 0.05243302, %v1349_v11  ;;  %v1389_v62 = vmul.f32 %v1388_v30, %v3300_v21  ;;  %v1037_v16 = vadd.f32 0.001143296, %v1036_v41  ;;  %v895_v32 = vand.u32 2147483647, %v3328_v51 }
 0x174   : > { %4128 = vst [vmem:[#allocation15_spill] sm:$0xff] %v3369_v40  ;;  %2013 = vmatmul.f32.gmra.mxu3 %v1862_v59  ;;  %v888_v23 = vsub.f32 1.0, %v887_v0  ;;  %v962_v49 = vmul.f32 %v961_v8, %v2942_v6  ;;  %v1001_v56 = vadd.f32 0.112945676, %v1000_v42  ;;  %v1273_v26 = vmul.f32 %v1272_v4, %v3243_v14 }
 0x175   : > { %v897_v5 = vand.u32 2147483648, %v3328_v51  ;;  %v3379_v44 = vmul.f32 0.70710677, %v3362_v24  ;;  %v3382_v43 = vadd.f32 %v464_v63, %v2777_v54  ;;  %vm892_vm0 = vweird.f32 %v2342_v38 }
 0x176   : > { %v889_v2 = vmul.f32 %v2342_v38, %v888_v23  ;;  %v963_v47 = vadd.f32 0.4994258, %v962_v49  ;;  %v1002_v12 = vmul.f32 %v1001_v56, %v2984_v13  ;;  %v1312_v52 = vadd.f32 0.18741608, %v1311_v33 }
 0x177   : > { %v2344_v46 = vpop.eup %2343  ;;  %v1351_v11 = vmul.f32 %v1350_v10, %v3292_v17  ;;  %v1390_v30 = vadd.f32 0.05243302, %v1389_v62  ;;  %v1038_v41 = vmul.f32 %v1037_v16, %v3009_v1  ;;  %vm891_vm1 = vweird.f32 %v3328_v51 }
 0x178   : > { %v890_v35 = vadd.f32 %v2342_v38, %v889_v2  ;;  %vm896_vm2 = vcmp.eq.f32.partialorder %v895_v32, 8.507059e+37  ;;  %v927_v8 = vmul.f32 %v2344_v46, %v3350_v15  ;;  %vm893_vm3 = vmor %vm891_vm1, %vm892_vm0  ;;  %v898_v42 = vor.u32 1.1754944e-38, %v897_v5  ;;  %v4129_v32 = vld [vmem:[#allocation23_spill] sm:$0xff] }
 0x179   : > { %v3390_v4 = vmul.f32 0.70710677, %v3382_v43  ;;  %v964_v25 = vmul.f32 %v963_v47, %v2942_v6  ;;  %v1003_v59 = vadd.f32 0.4994258, %v1002_v12  ;;  %v937_v33 = vand.u32 2147483648, %v3350_v15 }
 0x17a   : > { %v894_v0 = vsel %vm893_vm3, %v2342_v38, %v890_v35  ;;  %v928_v63 = vsub.f32 1.0, %v927_v8  ;;  %v1423_v10 = vmul.f32 %v3379_v44, %v3379_v44  ;;  %v1039_v23 = vadd.f32 0.014752088, %v1038_v41 }
 0x17b   : > { %v899_v62 = vsel %vm896_vm2, %v898_v42, %v894_v0  ;;  %v3396_v51 = vadd.f32 1.0, %v964_v25  ;;  %v1004_v16 = vmul.f32 %v1003_v59, %v2984_v13  ;;  %vm932_vm4 = vweird.f32 %v2344_v46  ;;  %v402_v13 = vpop.f32.mrf.mxu0 }
 0x17c   : > { %v900_v49 = vmul.f32 %v899_v62, %v4129_v32  ;;  %v929_v56 = vmul.f32 %v2344_v46, %v928_v63  ;;  %v935_v6 = vand.u32 2147483647, %v3350_v15  ;;  %v1274_v5 = vadd.f32 1.1283791, %v1273_v26  ;;  %v467_v63 = vpop.f32.mrf.mxu1  ;;  %v4131_v62 = vld [vmem:[#allocation16_spill] sm:$0xff] }
 0x17d   : > { %v1313_v38 = vmul.f32 %v1312_v52, %v3266_v55  ;;  %v1463_v2 = vmul.f32 %v3390_v4, %v3390_v4  ;;  %2345 = vrcp.f32 %v3396_v51  ;;  %v1352_v47 = vadd.f32 0.18741608, %v1351_v11 }
 0x17e   : > { %v2210_v12 = vclamps-f32 %v900_v49, 1.0  ;;  %v930_v35 = vadd.f32 %v2344_v46, %v929_v56  ;;  %vm931_vm5 = vweird.f32 %v3350_v15  ;;  %v938_v41 = vor.u32 1.1754944e-38, %v937_v33 }
 0x17f   : > { %vm933_vm6 = vmor %vm931_vm5, %vm932_vm4  ;;  %v3406_v8 = vmin.f32 %v1423_v10, 16.0  ;;  %v3408_v42 = vadd.f32 1.0, %v1004_v16  ;;  %v1040_v26 = vmul.f32 %v1039_v23, %v3009_v1  ;;  %v1391_v52 = vmul.f32 %v1390_v30, %v3300_v21 }
 0x180   : > { %v1831_v25 = vadd.f32 1.0, %v2210_v12  ;;  %v934_v59 = vsel %vm933_vm6, %v2344_v46, %v930_v35  ;;  %vm936_vm7 = vcmp.eq.f32.partialorder %v935_v6, 8.507059e+37  ;;  %v3412_v11 = vmin.f32 %v1463_v2, 16.0 }
 0x181   : > { %v939_v0 = vsel %vm936_vm7, %v938_v41, %v934_v59  ;;  %2347 = vrcp.f32 %v3408_v42  ;;  %v3416_v15 = vadd.f32 %v402_v13, %v2775_v53  ;;  %v3418_v33 = vadd.f32 1.1283791, %v1313_v38 }
 0x182   : > { %v3421_v10 = vmul.f32 0.5, %v3264_v34  ;;  %v1863_v16 = vmul.f32 %v1831_v25, %v4131_v62  ;;  %v940_v30 = vmul.f32 %v939_v0, %v3125_v31  ;;  %v3426_v23 = vmul.f32 %v1274_v5, %v3218_v57 }
 0x183   : > { %v2346_v46 = vpop.eup %2345  ;;  %v1425_v32 = vmul.f32 2.1237322e-06, %v3406_v8  ;;  %v1041_v49 = vadd.f32 0.112945676, %v1040_v26  ;;  %v1076_v56 = vmul.f32 3.8918573e-05, %v3049_v60  ;;  %v3434_v2 = vadd.f32 %v467_v63, %v2777_v54 }
 0x184   : > { %4130 = vst [vmem:[#allocation23_spill] sm:$0xff] %v3421_v10  ;;  %v3430_v6 = vadd.f32 0.18741608, %v1391_v52  ;;  %1951 = vmatmul.f32.gmra.mxu2 %v1863_v16  ;;  %v2211_v38 = vclamps-f32 %v940_v30, 1.0  ;;  %v967_v34 = vmul.f32 %v2346_v46, %v3396_v51  ;;  %v1353_v31 = vmul.f32 %v1352_v47, %v3292_v17  ;;  %v4132_v47 = vld [vmem:[#allocation17_spill] sm:$0xff] }
 0x185   : > { %v1465_v12 = vmul.f32 2.1237322e-06, %v3412_v11  ;;  %v975_v57 = vand.u32 2147483647, %v3396_v51  ;;  %v3440_v5 = vmul.f32 0.70710677, %v3416_v15  ;;  %vm972_vm8 = vweird.f32 %v2346_v46 }
 0x186   : > { %v1832_v35 = vadd.f32 1.0, %v2211_v38  ;;  %v968_v13 = vsub.f32 1.0, %v967_v34  ;;  %v977_v41 = vand.u32 2147483648, %v3396_v51  ;;  %v1116_v26 = vmul.f32 3.8918573e-05, %v3091_v29 }
 0x187   : > { %v2348_v52 = vpop.eup %2347  ;;  %v1426_v25 = vadd.f32 0.00028619796, %v1425_v32  ;;  %v1042_v59 = vmul.f32 %v1041_v49, %v3009_v1  ;;  %v1077_v0 = vadd.f32 0.001143296, %v1076_v56  ;;  %v3448_v30 = vmul.f32 0.70710677, %v3434_v2 }
 0x188   : > { %v1864_v63 = vmul.f32 %v1832_v35, %v4132_v47  ;;  %v969_v62 = vmul.f32 %v2346_v46, %v968_v13  ;;  %v1007_v16 = vmul.f32 %v2348_v52, %v3408_v42  ;;  %v1466_v38 = vadd.f32 0.00028619796, %v1465_v12 }
 0x189   : > { %vm971_vm9 = vweird.f32 %v3396_v51  ;;  %vm3451_vm10 = vcmp.eq.f32.partialorder %v975_v57, 8.507059e+37  ;;  %v1503_v32 = vmul.f32 %v3440_v5, %v3440_v5  ;;  %v978_v56 = vor.u32 1.1754944e-38, %v977_v41 }
 0x18a   : > { %2016 = vmatmul.f32.gmra.mxu3 %v1864_v63  ;;  %v970_v49 = vadd.f32 %v2346_v46, %v969_v62  ;;  %v1008_v35 = vsub.f32 1.0, %v1007_v16  ;;  %v1043_v13 = vadd.f32 0.4994258, %v1042_v59  ;;  %vm973_vm11 = vmor %vm971_vm9, %vm972_vm8  ;;  %vm1012_vm12 = vweird.f32 %v2348_v52 }
 0x18b   : > { %v1015_v47 = vand.u32 2147483647, %v3408_v42  ;;  %v1017_v12 = vand.u32 2147483648, %v3408_v42  ;;  %v1078_v51 = vmul.f32 %v1077_v0, %v3049_v60  ;;  %v1543_v40 = vmul.f32 %v3448_v30, %v3448_v30 }
 0x18c   : > { %v974_v57 = vsel %vm973_vm11, %v2346_v46, %v970_v49  ;;  %v1009_v10 = vmul.f32 %v2348_v52, %v1008_v35  ;;  %v1044_v63 = vmul.f32 %v1043_v13, %v3009_v1  ;;  %v1427_v41 = vmul.f32 %v1426_v25, %v3406_v8 }
 0x18d   : > { %v979_v59 = vsel %vm3451_vm10, %v978_v56, %v974_v57  ;;  %v3467_v62 = vmin.f32 %v1503_v32, 16.0  ;;  %v1079_v16 = vadd.f32 0.014752088, %v1078_v51  ;;  %vm1011_vm13 = vweird.f32 %v3408_v42 }
 0x18e   : > { %v980_v36 = vmul.f32 %v979_v59, %v3135_v22  ;;  %v1010_v45 = vadd.f32 %v2348_v52, %v1009_v10  ;;  %v3471_v46 = vadd.f32 1.0, %v1044_v63  ;;  %vm1013_vm14 = vmor %vm1011_vm13, %vm1012_vm12  ;;  %vm1016_vm15 = vcmp.eq.f32.partialorder %v1015_v47, 8.507059e+37 }
 0x18f   : > { %v1018_v0 = vor.u32 1.1754944e-38, %v1017_v12  ;;  %v1080_v1 = vmul.f32 %v1079_v16, %v3049_v60  ;;  %v1117_v25 = vadd.f32 0.001143296, %v1116_v26  ;;  %v3475_v56 = vmin.f32 %v1543_v40, 16.0 }
 0x190   : > { %v2212_v49 = vclamps-f32 %v980_v36, 1.0  ;;  %v1014_v34 = vsel %vm1013_vm14, %v2348_v52, %v1010_v45  ;;  %2349 = vrcp.f32 %v3471_v46  ;;  %v3479_v22 = vmul.f32 0.5, %v3362_v24  ;;  %v4137_v52 = vld [vmem:[#allocation18_spill] sm:$0xff] }
 0x191   : > { %v1467_v42 = vmul.f32 %v1466_v38, %v3412_v11  ;;  %v1019_v10 = vsel %vm1016_vm15, %v1018_v0, %v1014_v34  ;;  %v1505_v32 = vmul.f32 2.1237322e-06, %v3467_v62  ;;  %v3483_v35 = vadd.f32 1.1283791, %v1353_v31 }
 0x192   : > { %4135 = vst [vmem:[#allocation16_spill] sm:$0xff] %v3479_v22  ;;  %v1833_v13 = vadd.f32 1.0, %v2212_v49  ;;  %v1020_v47 = vmul.f32 %v1019_v10, %v3187_v50  ;;  %v1081_v26 = vadd.f32 0.112945676, %v1080_v1  ;;  %v1428_v36 = vadd.f32 0.0036580483, %v1427_v41  ;;  %v405_v41 = vpop.f32.mrf.mxu0 }
 0x193   : > { %v3487_v45 = vmul.f32 0.5, %v3382_v43  ;;  %v1118_v40 = vmul.f32 %v1117_v25, %v3091_v29  ;;  %v1156_v24 = vmul.f32 3.8918573e-05, %v3102_v19  ;;  %v1545_v51 = vmul.f32 2.1237322e-06, %v3475_v56  ;;  %v470_v43 = vpop.f32.mrf.mxu1  ;;  %v4139_v10 = vld [vmem:[#allocation19_spill] sm:$0xff] }
 0x194   : > { %v1865_v12 = vmul.f32 %v1833_v13, %v4137_v52  ;;  %v2213_v38 = vclamps-f32 %v1020_v47, 1.0  ;;  %v1082_v31 = vmul.f32 %v1081_v26, %v3049_v60  ;;  %v3496_v57 = vmul.f32 %v3418_v33, %v3238_v37 }
 0x195   : > { %4136 = vst [vmem:[#allocation17_spill] sm:$0xff] %v3487_v45  ;;  %v1468_v50 = vadd.f32 0.0036580483, %v1467_v42  ;;  %v1506_v63 = vadd.f32 0.00028619796, %v1505_v32  ;;  %v3499_v25 = vadd.f32 %v405_v41, %v2775_v53  ;;  %v3502_v49 = vadd.f32 %v470_v43, %v2777_v54 }
 0x196   : > { %v1119_v59 = vadd.f32 0.014752088, %v1118_v40  ;;  %v2350_v16 = vpop.eup %2349  ;;  %1954 = vmatmul.f32.gmra.mxu2 %v1865_v12  ;;  %v1834_v0 = vadd.f32 1.0, %v2213_v38  ;;  %v1083_v1 = vadd.f32 0.4994258, %v1082_v31  ;;  %v1393_v34 = vmul.f32 %v3430_v6, %v3300_v21 }
 0x197   : > { %4138 = vst [vmem:[#allocation18_spill] sm:$0xff] %v3502_v49  ;;  %v1429_v37 = vmul.f32 %v1428_v36, %v3406_v8  ;;  %v1047_v33 = vmul.f32 %v2350_v16, %v3471_v46  ;;  %v1157_v42 = vadd.f32 0.001143296, %v1156_v24  ;;  %v1546_v13 = vadd.f32 0.00028619796, %v1545_v51 }
 0x198   : > { %v1866_v32 = vmul.f32 %v1834_v0, %v4139_v10  ;;  %v1084_v47 = vmul.f32 %v1083_v1, %v3049_v60  ;;  %v3511_v26 = vmul.f32 0.70710677, %v3499_v25  ;;  %v1469_v40 = vmul.f32 %v1468_v50, %v3412_v11 }
 0x199   : > { %v1507_v52 = vmul.f32 %v1506_v63, %v3467_v62  ;;  %v1048_v12 = vsub.f32 1.0, %v1047_v33  ;;  %v1057_v6 = vand.u32 2147483648, %v3471_v46  ;;  %v3521_v38 = vmul.f32 0.70710677, %v3502_v49 }
 0x19a   : > { %2019 = vmatmul.f32.gmra.mxu3 %v1866_v32  ;;  %v3516_v36 = vadd.f32 1.0, %v1084_v47  ;;  %v1583_v24 = vmul.f32 %v3511_v26, %v3511_v26  ;;  %v1120_v60 = vmul.f32 %v1119_v59, %v3091_v29  ;;  %vm1052_vm0 = vweird.f32 %v2350_v16 }
 0x19b   : > { %v1049_v51 = vmul.f32 %v2350_v16, %v1048_v12  ;;  %v1055_v31 = vand.u32 2147483647, %v3471_v46  ;;  %v1158_v50 = vmul.f32 %v1157_v42, %v3102_v19  ;;  %v3526_v63 = vadd.f32 1.1283791, %v1393_v34 }
 0x19c   : > { %v1430_v41 = vadd.f32 0.05243302, %v1429_v37  ;;  %v1547_v43 = vmul.f32 %v1546_v13, %v3475_v56  ;;  %2351 = vrcp.f32 %v3516_v36  ;;  %v1470_v0 = vadd.f32 0.05243302, %v1469_v40 }
 0x19d   : > { %v1050_v1 = vadd.f32 %v2350_v16, %v1049_v51  ;;  %vm1051_vm1 = vweird.f32 %v3471_v46  ;;  %v3531_v33 = vmin.f32 %v1583_v24, 16.0  ;;  %v1508_v59 = vadd.f32 0.0036580483, %v1507_v52 }
 0x19e   : > { %vm1053_vm2 = vmor %vm1051_vm1, %vm1052_vm0  ;;  %v1058_v10 = vor.u32 1.1754944e-38, %v1057_v6  ;;  %v1623_v32 = vmul.f32 %v3521_v38, %v3521_v38  ;;  %v1121_v42 = vadd.f32 0.112945676, %v1120_v60  ;;  %vm1056_vm3 = vcmp.eq.f32.partialorder %v1055_v31, 8.507059e+37 }
 0x19f   : > { %v1054_v34 = vsel %vm1053_vm2, %v2350_v16, %v1050_v1  ;;  %v1585_v37 = vmul.f32 2.1237322e-06, %v3531_v33  ;;  %v1159_v13 = vadd.f32 0.014752088, %v1158_v50  ;;  %v1548_v47 = vadd.f32 0.0036580483, %v1547_v43 }
 0x1a0   : > { %v1059_v12 = vsel %vm1056_vm3, %v1058_v10, %v1054_v34  ;;  %v3536_v40 = vmin.f32 %v1623_v32, 16.0  ;;  %v1122_v46 = vmul.f32 %v1121_v42, %v3091_v29  ;;  %v3540_v24 = vmul.f32 0.5, %v3416_v15 }
 0x1a1   : > { %v1060_v52 = vmul.f32 %v1059_v12, %v3196_v58  ;;  %v1160_v6 = vmul.f32 %v1159_v13, %v3102_v19  ;;  %v1196_v60 = vmul.f32 3.8918573e-05, %v3162_v28  ;;  %v3547_v51 = vmul.f32 %v3483_v35, %v3273_v39 }
 0x1a2   : > { %4140 = vst [vmem:[#allocation19_spill] sm:$0xff] %v3540_v24  ;;  %v2352_v16 = vpop.eup %2351  ;;  %v1586_v31 = vadd.f32 0.00028619796, %v1585_v37  ;;  %v1625_v50 = vmul.f32 2.1237322e-06, %v3536_v40  ;;  %v1431_v1 = vmul.f32 %v1430_v41, %v3406_v8  ;;  %v1471_v15 = vmul.f32 %v1470_v0, %v3412_v11 }
 0x1a3   : > { %v1123_v43 = vadd.f32 0.4994258, %v1122_v46  ;;  %v2214_v10 = vclamps-f32 %v1060_v52, 1.0  ;;  %v1087_v58 = vmul.f32 %v2352_v16, %v3516_v36  ;;  %v1509_v32 = vmul.f32 %v1508_v59, %v3467_v62  ;;  %v4141_v52 = vld [vmem:[#allocation20_spill] sm:$0xff] }
 0x1a4   : > { %v1549_v42 = vmul.f32 %v1548_v47, %v3475_v56  ;;  %v1161_v13 = vadd.f32 0.112945676, %v1160_v6  ;;  %v1097_v37 = vand.u32 2147483648, %v3516_v36  ;;  %v1197_v12 = vadd.f32 0.001143296, %v1196_v60 }
 0x1a5   : > { %v1124_v34 = vmul.f32 %v1123_v43, %v3091_v29  ;;  %v1835_v39 = vadd.f32 1.0, %v2214_v10  ;;  %v1088_v35 = vsub.f32 1.0, %v1087_v58  ;;  %v1587_v46 = vmul.f32 %v1586_v31, %v3531_v33  ;;  %v408_v43 = vpop.f32.mrf.mxu0  ;;  %v473_v10 = vpop.f32.mrf.mxu1 }
 0x1a6   : > { %v1626_v41 = vadd.f32 0.00028619796, %v1625_v50  ;;  %v1162_v0 = vmul.f32 %v1161_v13, %v3102_v19  ;;  %vm1092_vm4 = vweird.f32 %v2352_v16  ;;  %v1095_v47 = vand.u32 2147483647, %v3516_v36 }
 0x1a7   : > { %v3558_v49 = vadd.f32 1.0, %v1124_v34  ;;  %v1867_v24 = vmul.f32 %v1835_v39, %v4141_v52  ;;  %v1089_v59 = vmul.f32 %v2352_v16, %v1088_v35  ;;  %v3563_v29 = vadd.f32 0.18741608, %v1431_v1 }
 0x1a8   : > { %v1510_v6 = vadd.f32 0.05243302, %v1509_v32  ;;  %vm1091_vm5 = vweird.f32 %v3516_v36  ;;  %v1098_v31 = vor.u32 1.1754944e-38, %v1097_v37  ;;  %v1163_v50 = vadd.f32 0.4994258, %v1162_v0 }
 0x1a9   : > { %2353 = vrcp.f32 %v3558_v49  ;;  %1957 = vmatmul.f32.gmra.mxu2 %v1867_v24  ;;  %v1090_v60 = vadd.f32 %v2352_v16, %v1089_v59  ;;  %v1198_v58 = vmul.f32 %v1197_v12, %v3162_v28  ;;  %vm1093_vm6 = vmor %vm1091_vm5, %vm1092_vm4  ;;  %v1588_v34 = vadd.f32 0.0036580483, %v1587_v46 }
 0x1aa   : > { %v1627_v13 = vmul.f32 %v1626_v41, %v3536_v40  ;;  %v3570_v1 = vadd.f32 %v408_v43, %v2775_v53  ;;  %v3573_v32 = vadd.f32 %v473_v10, %v2777_v54  ;;  %v1550_v36 = vadd.f32 0.05243302, %v1549_v42 }
 0x1ab   : > { %v1094_v39 = vsel %vm1093_vm6, %v2352_v16, %v1090_v60  ;;  %vm1096_vm7 = vcmp.eq.f32.partialorder %v1095_v47, 8.507059e+37  ;;  %v1164_v24 = vmul.f32 %v1163_v50, %v3102_v19  ;;  %v1511_v35 = vmul.f32 %v1510_v6, %v3467_v62 }
 0x1ac   : > { %4142 = vst [vmem:[#allocation20_spill] sm:$0xff] %v3570_v1  ;;  %v1099_v37 = vsel %vm1096_vm7, %v1098_v31, %v1094_v39  ;;  %v3578_v12 = vmul.f32 0.70710677, %v3570_v1  ;;  %v1236_v46 = vmul.f32 3.8918573e-05, %v3166_v20  ;;  %v1589_v16 = vmul.f32 %v1588_v34, %v3531_v33 }
 0x1ad   : > { %4143 = vst [vmem:[#allocation28_spill] sm:$0xff] %v3573_v32  ;;  %v3581_v41 = vadd.f32 0.18741608, %v1471_v15  ;;  %v1100_v0 = vmul.f32 %v1099_v37, %v3310_v9  ;;  %v3584_v52 = vadd.f32 1.0, %v1164_v24  ;;  %v1199_v59 = vadd.f32 0.014752088, %v1198_v58 }
 0x1ae   : > { %4144 = vst [vmem:[#allocation29_spill] sm:$0xff] %v3578_v12  ;;  %v1628_v47 = vadd.f32 0.0036580483, %v1627_v13  ;;  %v1663_v19 = vmul.f32 %v3578_v12, %v3578_v12  ;;  %v3590_v6 = vmul.f32 0.70710677, %v3573_v32  ;;  %v3593_v60 = vmul.f32 0.5, %v3434_v2 }
 0x1af   : > { %v2354_v42 = vpop.eup %2353  ;;  %v1551_v15 = vmul.f32 %v1550_v36, %v3475_v56  ;;  %v2215_v31 = vclamps-f32 %v1100_v0, 1.0  ;;  %v3597_v50 = vadd.f32 0.18741608, %v1511_v35  ;;  %v1135_v43 = vand.u32 2147483647, %v3558_v49  ;;  %v4147_v0 = vld [vmem:[#allocation21_spill] sm:$0xff] }
 0x1b0   : > { %4145 = vst [vmem:[#allocation30_spill] sm:$0xff] %v3590_v6  ;;  %v1127_v9 = vmul.f32 %v2354_v42, %v3558_v49  ;;  %2355 = vrcp.f32 %v3584_v52  ;;  %v1237_v10 = vadd.f32 0.001143296, %v1236_v46  ;;  %v1137_v13 = vand.u32 2147483648, %v3558_v49 }
 0x1b1   : > { %4146 = vst [vmem:[#allocation31_spill] sm:$0xff] %v3593_v60  ;;  %v1836_v58 = vadd.f32 1.0, %v2215_v31  ;;  %v1200_v39 = vmul.f32 %v1199_v59, %v3162_v28  ;;  %v1590_v2 = vadd.f32 0.05243302, %v1589_v16  ;;  %v1629_v24 = vmul.f32 %v1628_v47, %v3536_v40 }
 0x1b2   : > { %v1128_v34 = vsub.f32 1.0, %v1127_v9  ;;  %v3604_v36 = vmin.f32 %v1663_v19, 16.0  ;;  %v1703_v35 = vmul.f32 %v3590_v6, %v3590_v6  ;;  %v3608_v37 = vadd.f32 0.18741608, %v1551_v15 }
 0x1b3   : > { %v1868_v32 = vmul.f32 %v1836_v58, %v4147_v0  ;;  %vm1132_vm8 = vweird.f32 %v2354_v42  ;;  %vm1131_vm9 = vweird.f32 %v3558_v49  ;;  %v1238_v59 = vmul.f32 %v1237_v10, %v3166_v20 }
 0x1b4   : > { %v1129_v1 = vmul.f32 %v2354_v42, %v1128_v34  ;;  %v1665_v46 = vmul.f32 2.1237322e-06, %v3604_v36  ;;  %v3613_v31 = vmin.f32 %v1703_v35, 16.0  ;;  %vm1136_vm10 = vcmp.eq.f32.partialorder %v1135_v43, 8.507059e+37  ;;  %vm1133_vm11 = vmor %vm1131_vm9, %vm1132_vm8 }
 0x1b5   : > { %2022 = vmatmul.f32.gmra.mxu3 %v1868_v32  ;;  %v1138_v47 = vor.u32 1.1754944e-38, %v1137_v13  ;;  %v1201_v19 = vadd.f32 0.112945676, %v1200_v39  ;;  %v1591_v15 = vmul.f32 %v1590_v2, %v3531_v33  ;;  %v1630_v6 = vadd.f32 0.05243302, %v1629_v24 }
 0x1b6   : > { %v1130_v16 = vadd.f32 %v2354_v42, %v1129_v1  ;;  %v2356_v9 = vpop.eup %2355  ;;  %v1666_v58 = vadd.f32 0.00028619796, %v1665_v46  ;;  %v1239_v34 = vadd.f32 0.014752088, %v1238_v59  ;;  %v1276_v12 = vmul.f32 3.8918573e-05, %v3243_v14 }
 0x1b7   : > { %v1167_v49 = vmul.f32 %v2356_v9, %v3584_v52  ;;  %v1202_v35 = vmul.f32 %v1201_v19, %v3162_v28  ;;  %v1705_v32 = vmul.f32 2.1237322e-06, %v3613_v31  ;;  %v1316_v24 = vmul.f32 3.8918573e-05, %v3266_v55 }
 0x1b8   : > { %v1134_v0 = vsel %vm1133_vm11, %v2354_v42, %v1130_v16  ;;  %v1667_v1 = vmul.f32 %v1666_v58, %v3604_v36  ;;  %v1240_v43 = vmul.f32 %v1239_v34, %v3166_v20  ;;  %vm1171_vm12 = vweird.f32 %v3584_v52 }
 0x1b9   : > { %v1139_v10 = vsel %vm1136_vm10, %v1138_v47, %v1134_v0  ;;  %v1168_v39 = vsub.f32 1.0, %v1167_v49  ;;  %v1203_v2 = vadd.f32 0.4994258, %v1202_v35  ;;  %v1175_v42 = vand.u32 2147483647, %v3584_v52 }
 0x1ba   : > { %v1140_v13 = vmul.f32 %v1139_v10, %v3336_v61  ;;  %v1177_v46 = vand.u32 2147483648, %v3584_v52  ;;  %v1241_v59 = vadd.f32 0.112945676, %v1240_v43  ;;  %vm1172_vm13 = vweird.f32 %v2356_v9 }
 0x1bb   : > { %v1169_v47 = vmul.f32 %v2356_v9, %v1168_v39  ;;  %v1204_v19 = vmul.f32 %v1203_v2, %v3162_v28  ;;  %v1668_v58 = vadd.f32 0.0036580483, %v1667_v1  ;;  %v1706_v34 = vadd.f32 0.00028619796, %v1705_v32  ;;  %vm1173_vm14 = vmor %vm1171_vm12, %vm1172_vm13  ;;  %v4148_v28 = vld [vmem:[#allocation24_spill] sm:$0xff] }
 0x1bc   : > { %v2216_v16 = vclamps-f32 %v1140_v13, 1.0  ;;  %v1242_v61 = vmul.f32 %v1241_v59, %v3166_v20  ;;  %v1277_v0 = vadd.f32 0.001143296, %v1276_v12  ;;  %v1317_v60 = vadd.f32 0.001143296, %v1316_v24  ;;  %v411_v24 = vpop.f32.mrf.mxu0 }
 0x1bd   : > { %v1170_v35 = vadd.f32 %v2356_v9, %v1169_v47  ;;  %v3630_v10 = vadd.f32 1.0, %v1204_v19  ;;  %v1433_v45 = vmul.f32 %v3563_v29, %v3406_v8  ;;  %v1592_v22 = vadd.f32 0.18741608, %v1591_v15 }
 0x1be   : > { %v1837_v49 = vadd.f32 1.0, %v2216_v16  ;;  %v1178_v43 = vor.u32 1.1754944e-38, %v1177_v46  ;;  %v1243_v13 = vadd.f32 0.4994258, %v1242_v61  ;;  %vm1176_vm15 = vcmp.eq.f32.partialorder %v1175_v42, 8.507059e+37 }
 0x1bf   : > { %v1174_v32 = vsel %vm1173_vm14, %v2356_v9, %v1170_v35  ;;  %2357 = vrcp.f32 %v3630_v10  ;;  %v1631_v12 = vmul.f32 %v1630_v6, %v3536_v40  ;;  %v1707_v2 = vmul.f32 %v1706_v34, %v3613_v31 }
 0x1c0   : > { %v1869_v1 = vmul.f32 %v1837_v49, %v4148_v28  ;;  %v1179_v39 = vsel %vm1176_vm15, %v1178_v43, %v1174_v32  ;;  %v1278_v29 = vmul.f32 %v1277_v0, %v3243_v14  ;;  %v1669_v15 = vmul.f32 %v1668_v58, %v3604_v36 }
 0x1c1   : > { %v1180_v52 = vmul.f32 %v1179_v39, %v3342_v27  ;;  %v1244_v46 = vmul.f32 %v1243_v13, %v3166_v20  ;;  %v1318_v9 = vmul.f32 %v1317_v60, %v3266_v55  ;;  %v3645_v42 = vadd.f32 1.1283791, %v1433_v45  ;;  %v476_v13 = vpop.f32.mrf.mxu1 }
 0x1c2   : > { %1960 = vmatmul.f32.gmra.mxu2 %v1869_v1  ;;  %v1473_v6 = vmul.f32 %v3581_v41, %v3412_v11  ;;  %v1513_v59 = vmul.f32 %v3597_v50, %v3467_v62  ;;  %v1553_v16 = vmul.f32 %v3608_v37, %v3475_v56  ;;  %v1593_v47 = vmul.f32 %v1592_v22, %v3531_v33 }
 0x1c3   : > { %v2217_v27 = vclamps-f32 %v1180_v52, 1.0  ;;  %v3654_v19 = vadd.f32 1.0, %v1244_v46  ;;  %v3657_v20 = vadd.f32 %v411_v24, %v2775_v53  ;;  %v3661_v45 = vmul.f32 %v3526_v63, %v3283_v48 }
 0x1c4   : > { %v1632_v60 = vadd.f32 0.18741608, %v1631_v12  ;;  %v1708_v41 = vadd.f32 0.0036580483, %v1707_v2  ;;  %v1279_v58 = vadd.f32 0.014752088, %v1278_v29  ;;  %vm1211_vm0 = vweird.f32 %v3630_v10 }
 0x1c5   : > { %v2358_v34 = vpop.eup %2357  ;;  %v1838_v50 = vadd.f32 1.0, %v2217_v27  ;;  %v1670_v61 = vadd.f32 0.05243302, %v1669_v15  ;;  %2359 = vrcp.f32 %v3654_v19  ;;  %v1319_v37 = vadd.f32 0.014752088, %v1318_v9 }
 0x1c6   : > { %v3664_v22 = vadd.f32 1.1283791, %v1473_v6  ;;  %v3666_v0 = vadd.f32 1.1283791, %v1513_v59  ;;  %v3668_v49 = vadd.f32 1.1283791, %v1553_v16  ;;  %v1207_v53 = vmul.f32 %v2358_v34, %v3630_v10 }
 0x1c7   : > { %v3671_v35 = vadd.f32 1.1283791, %v1593_v47  ;;  %v1870_v48 = vmul.f32 %v1838_v50, %v3199_v18  ;;  %v1215_v63 = vand.u32 2147483647, %v3630_v10  ;;  %v3676_v43 = vmul.f32 0.70710677, %v3657_v20 }
 0x1c8   : > { %v1633_v28 = vmul.f32 %v1632_v60, %v3536_v40  ;;  %v1709_v1 = vmul.f32 %v1708_v41, %v3613_v31  ;;  %v1208_v32 = vsub.f32 1.0, %v1207_v53  ;;  %v1217_v12 = vand.u32 2147483648, %v3630_v10 }
 0x1c9   : > { %2025 = vmatmul.f32.gmra.mxu3 %v1870_v48  ;;  %v1671_v39 = vmul.f32 %v1670_v61, %v3604_v36  ;;  %v1280_v18 = vmul.f32 %v1279_v58, %v3243_v14  ;;  %v1320_v2 = vmul.f32 %v1319_v37, %v3266_v55  ;;  %vm1212_vm1 = vweird.f32 %v2358_v34 }
 0x1ca   : > { %v1209_v24 = vmul.f32 %v2358_v34, %v1208_v32  ;;  %v3686_v29 = vadd.f32 %v476_v13, %v2777_v54  ;;  %v1356_v52 = vmul.f32 3.8918573e-05, %v3292_v17  ;;  %vm3689_vm2 = vcmp.eq.f32.partialorder %v1215_v63, 8.507059e+37  ;;  %vm1213_vm3 = vmor %vm1211_vm0, %vm1212_vm1 }
 0x1cb   : > { %v2360_v15 = vpop.eup %2359  ;;  %v1743_v9 = vmul.f32 %v3676_v43, %v3676_v43  ;;  %v1281_v6 = vadd.f32 0.112945676, %v1280_v18  ;;  %v1321_v59 = vadd.f32 0.112945676, %v1320_v2  ;;  %v1218_v47 = vor.u32 1.1754944e-38, %v1217_v12 }
 0x1cc   : > { %v1210_v16 = vadd.f32 %v2358_v34, %v1209_v24  ;;  %v1247_v27 = vmul.f32 %v2360_v15, %v3654_v19  ;;  %v1255_v60 = vand.u32 2147483647, %v3654_v19  ;;  %v1257_v54 = vand.u32 2147483648, %v3654_v19 }
 0x1cd   : > { %v1282_v41 = vmul.f32 %v1281_v6, %v3243_v14  ;;  %v1322_v58 = vmul.f32 %v1321_v59, %v3266_v55  ;;  %v1357_v50 = vadd.f32 0.001143296, %v1356_v52  ;;  %v3703_v53 = vmul.f32 0.70710677, %v3686_v29 }
 0x1ce   : > { %v1214_v61 = vsel %vm1213_vm3, %v2358_v34, %v1210_v16  ;;  %v1248_v37 = vsub.f32 1.0, %v1247_v27  ;;  %v1396_v48 = vmul.f32 3.8918573e-05, %v3300_v21  ;;  %v3708_v13 = vmin.f32 %v1743_v9, 16.0 }
 0x1cf   : > { %v1219_v63 = vsel %vm3689_vm2, %v1218_v47, %v1214_v61  ;;  %v1283_v10 = vadd.f32 0.4994258, %v1282_v41  ;;  %v1323_v32 = vadd.f32 0.4994258, %v1322_v58  ;;  %vm1252_vm4 = vweird.f32 %v2360_v15 }
 0x1d0   : > { %v1220_v12 = vmul.f32 %v1219_v63, %v3358_v7  ;;  %v1249_v18 = vmul.f32 %v2360_v15, %v1248_v37  ;;  %v1358_v2 = vmul.f32 %v1357_v50, %v3292_v17  ;;  %v1710_v34 = vadd.f32 0.05243302, %v1709_v1 }
 0x1d1   : > { %vm1251_vm5 = vweird.f32 %v3654_v19  ;;  %v1284_v24 = vmul.f32 %v1283_v10, %v3243_v14  ;;  %v1324_v52 = vmul.f32 %v1323_v32, %v3266_v55  ;;  %v1397_v9 = vadd.f32 0.001143296, %v1396_v48 }
 0x1d2   : > { %v2218_v6 = vclamps-f32 %v1220_v12, 1.0  ;;  %v1250_v46 = vadd.f32 %v2360_v15, %v1249_v18  ;;  %v1359_v59 = vadd.f32 0.014752088, %v1358_v2  ;;  %vm1253_vm6 = vmor %vm1251_vm5, %vm1252_vm4  ;;  %v1258_v16 = vor.u32 1.1754944e-38, %v1257_v54  ;;  %v4151_v54 = vld [vmem:[#allocation25_spill] sm:$0xff] }
 0x1d3   : > { %v1783_v7 = vmul.f32 %v3703_v53, %v3703_v53  ;;  %v3717_v47 = vadd.f32 1.0, %v1284_v24  ;;  %v3719_v27 = vadd.f32 1.0, %v1324_v52  ;;  %vm1256_vm7 = vcmp.eq.f32.partialorder %v1255_v60, 8.507059e+37 }
 0x1d4   : > { %v1839_v1 = vadd.f32 1.0, %v2218_v6  ;;  %v1254_v41 = vsel %vm1253_vm6, %v2360_v15, %v1250_v46  ;;  %v1745_v14 = vmul.f32 2.1237322e-06, %v3708_v13  ;;  %v1634_v19 = vadd.f32 1.1283791, %v1633_v28 }
 0x1d5   : > { %v1259_v55 = vsel %vm1256_vm7, %v1258_v16, %v1254_v41  ;;  %2361 = vrcp.f32 %v3717_v47  ;;  %v1360_v58 = vmul.f32 %v1359_v59, %v3292_v17  ;;  %v1672_v50 = vadd.f32 0.18741608, %v1671_v39 }
 0x1d6   : > { %v1871_v61 = vmul.f32 %v1839_v1, %v4151_v54  ;;  %v1260_v37 = vmul.f32 %v1259_v55, %v3365_v3  ;;  %v1398_v48 = vmul.f32 %v1397_v9, %v3300_v21  ;;  %v3729_v63 = vmul.f32 %v3645_v42, %v3379_v44 }
 0x1d7   : > { %v1711_v15 = vmul.f32 %v1710_v34, %v3613_v31  ;;  %v3732_v60 = vmin.f32 %v1783_v7, 16.0  ;;  %2363 = vrcp.f32 %v3719_v27  ;;  %v3737_v28 = vmul.f32 %v3664_v22, %v3390_v4 }
 0x1d8   : > { %v3740_v39 = vmul.f32 0.5, %v3499_v25  ;;  %1963 = vmatmul.f32.gmra.mxu2 %v1871_v61  ;;  %v2219_v3 = vclamps-f32 %v1260_v37, 1.0  ;;  %v1746_v10 = vadd.f32 0.00028619796, %v1745_v14  ;;  %v3744_v44 = vmul.f32 %v3666_v0, %v3440_v5 }
 0x1d9   : > { %v3748_v42 = vmul.f32 %v3668_v49, %v3448_v30  ;;  %v3752_v32 = vmul.f32 %v3671_v35, %v3511_v26  ;;  %v1361_v4 = vadd.f32 0.112945676, %v1360_v58  ;;  %v3755_v22 = vmul.f32 %v1634_v19, %v3521_v38  ;;  %v4152_v26 = vld [vmem:[#allocation26_spill] sm:$0xff] }
 0x1da   : > { %v3758_v25 = vmul.f32 %v1672_v50, %v3604_v36  ;;  %v1840_v12 = vadd.f32 1.0, %v2219_v3  ;;  %v1399_v18 = vadd.f32 0.014752088, %v1398_v48  ;;  %v3760_v5 = vadd.f32 0.18741608, %v1711_v15 }
 0x1db   : > { %v2362_v2 = vpop.eup %2361  ;;  %v1785_v0 = vmul.f32 2.1237322e-06, %v3732_v60  ;;  %v1362_v30 = vmul.f32 %v1361_v4, %v3292_v17  ;;  %v1436_v49 = vmul.f32 3.8918573e-05, %v3406_v8  ;;  %v3767_v34 = vmul.f32 %v1746_v10, %v3708_v13 }
 0x1dc   : > { %v1872_v35 = vmul.f32 %v1840_v12, %v4152_v26  ;;  %v1287_v38 = vmul.f32 %v2362_v2, %v3717_v47  ;;  %vm1291_vm8 = vweird.f32 %v3717_v47  ;;  %v1295_v52 = vand.u32 2147483647, %v3717_v47 }
 0x1dd   : > { %v2364_v24 = vpop.eup %2363  ;;  %v1363_v6 = vadd.f32 0.4994258, %v1362_v30  ;;  %v1400_v46 = vmul.f32 %v1399_v18, %v3300_v21  ;;  %v1437_v59 = vadd.f32 0.001143296, %v1436_v49  ;;  %v1297_v16 = vand.u32 2147483648, %v3717_v47 }
 0x1de   : > { %2028 = vmatmul.f32.gmra.mxu3 %v1872_v35  ;;  %v1288_v9 = vsub.f32 1.0, %v1287_v38  ;;  %v1327_v7 = vmul.f32 %v2364_v24, %v3719_v27  ;;  %vm1331_vm9 = vweird.f32 %v3719_v27  ;;  %v1335_v1 = vand.u32 2147483647, %v3719_v27 }
 0x1df   : > { %v1364_v41 = vmul.f32 %v1363_v6, %v3292_v17  ;;  %v1401_v14 = vadd.f32 0.112945676, %v1400_v46  ;;  %v1438_v19 = vmul.f32 %v1437_v59, %v3406_v8  ;;  %vm1292_vm10 = vweird.f32 %v2362_v2 }
 0x1e0   : > { %v1289_v55 = vmul.f32 %v2362_v2, %v1288_v9  ;;  %v1328_v58 = vsub.f32 1.0, %v1327_v7  ;;  %v1476_v50 = vmul.f32 3.8918573e-05, %v3412_v11  ;;  %v1337_v54 = vand.u32 2147483648, %v3719_v27  ;;  %vm1293_vm12 = vmor %vm1291_vm8, %vm1292_vm10 }
 0x1e1   : > { %v3781_v61 = vadd.f32 1.0, %v1364_v41  ;;  %v1402_v37 = vmul.f32 %v1401_v14, %v3300_v21  ;;  %v1439_v48 = vadd.f32 0.014752088, %v1438_v19  ;;  %vm1332_vm11 = vweird.f32 %v2364_v24 }
 0x1e2   : > { %v1290_v15 = vadd.f32 %v2362_v2, %v1289_v55  ;;  %v1329_v3 = vmul.f32 %v2364_v24, %v1328_v58  ;;  %v1477_v10 = vadd.f32 0.001143296, %v1476_v50  ;;  %vm1296_vm13 = vcmp.eq.f32.partialorder %v1295_v52, 8.507059e+37  ;;  %vm1333_vm14 = vmor %vm1331_vm9, %vm1332_vm11 }
 0x1e3   : > { %v1298_v17 = vor.u32 1.1754944e-38, %v1297_v16  ;;  %2365 = vrcp.f32 %v3781_v61  ;;  %v1516_v4 = vmul.f32 3.8918573e-05, %v3467_v62  ;;  %v1403_v30 = vadd.f32 0.4994258, %v1402_v37 }
 0x1e4   : > { %v1294_v12 = vsel %vm1293_vm12, %v2362_v2, %v1290_v15  ;;  %v1330_v18 = vadd.f32 %v2364_v24, %v1329_v3  ;;  %v1440_v49 = vmul.f32 %v1439_v48, %v3406_v8  ;;  %vm1336_vm15 = vcmp.eq.f32.partialorder %v1335_v1, 8.507059e+37 }
 0x1e5   : > { %v1299_v26 = vsel %vm1296_vm13, %v1298_v17, %v1294_v12  ;;  %v1338_v35 = vor.u32 1.1754944e-38, %v1337_v54  ;;  %v1478_v47 = vmul.f32 %v1477_v10, %v3412_v11  ;;  %v1404_v6 = vmul.f32 %v1403_v30, %v3300_v21 }
 0x1e6   : > { %v1300_v38 = vmul.f32 %v1299_v26, %v3426_v23  ;;  %v1334_v52 = vsel %vm1333_vm14, %v2364_v24, %v1330_v18  ;;  %v1441_v46 = vadd.f32 0.112945676, %v1440_v49  ;;  %v1517_v9 = vadd.f32 0.001143296, %v1516_v4  ;;  %v4154_v18 = vld [vmem:[#allocation27_spill] sm:$0xff] }
 0x1e7   : > { %v1339_v59 = vsel %vm1336_vm15, %v1338_v35, %v1334_v52  ;;  %v1479_v2 = vadd.f32 0.014752088, %v1478_v47  ;;  %v1556_v16 = vmul.f32 3.8918573e-05, %v3475_v56  ;;  %v3796_v27 = vadd.f32 1.0, %v1404_v6 }
 0x1e8   : > { %v2220_v7 = vclamps-f32 %v1300_v38, 1.0  ;;  %v1340_v41 = vmul.f32 %v1339_v59, %v3496_v57  ;;  %v1442_v1 = vmul.f32 %v1441_v46, %v3406_v8  ;;  %v3800_v19 = vadd.f32 1.1283791, %v3758_v25 }
 0x1e9   : > { %v2366_v14 = vpop.eup %2365  ;;  %v3802_v23 = vadd.f32 0.00028619796, %v1785_v0  ;;  %v1480_v21 = vmul.f32 %v1479_v2, %v3412_v11  ;;  %v1518_v24 = vmul.f32 %v1517_v9, %v3467_v62  ;;  %v1557_v54 = vadd.f32 0.001143296, %v1556_v16  ;;  %v4153_v0 = vld [vmem:[#allocation22_spill] sm:$0xff] }
 0x1ea   : > { %v1841_v55 = vadd.f32 1.0, %v2220_v7  ;;  %v2221_v58 = vclamps-f32 %v1340_v41, 1.0  ;;  %v1367_v50 = vmul.f32 %v2366_v14, %v3781_v61  ;;  %v3808_v57 = vadd.f32 0.0036580483, %v3767_v34 }
 0x1eb   : > { %v1377_v37 = vand.u32 2147483648, %v3781_v61  ;;  %2367 = vrcp.f32 %v3796_v27  ;;  %v1596_v25 = vmul.f32 3.8918573e-05, %v3531_v33  ;;  %v1443_v10 = vadd.f32 0.4994258, %v1442_v1 }
 0x1ec   : > { %v1873_v48 = vmul.f32 %v1841_v55, %v4153_v0  ;;  %v1842_v15 = vadd.f32 1.0, %v2221_v58  ;;  %v1368_v3 = vsub.f32 1.0, %v1367_v50  ;;  %vm1372_vm0 = vweird.f32 %v2366_v14 }
 0x1ed   : > { %v1375_v17 = vand.u32 2147483647, %v3781_v61  ;;  %v1481_v4 = vadd.f32 0.112945676, %v1480_v21  ;;  %v1519_v12 = vadd.f32 0.014752088, %v1518_v24  ;;  %v1444_v49 = vmul.f32 %v1443_v10, %v3406_v8 }
 0x1ee   : > { %1966 = vmatmul.f32.gmra.mxu2 %v1873_v48  ;;  %v1874_v34 = vmul.f32 %v1842_v15, %v4154_v18  ;;  %v1369_v30 = vmul.f32 %v2366_v14, %v1368_v3  ;;  %v1558_v26 = vmul.f32 %v1557_v54, %v3475_v56  ;;  %vm1371_vm1 = vweird.f32 %v3781_v61 }
 0x1ef   : > { %v1482_v35 = vmul.f32 %v1481_v4, %v3412_v11  ;;  %v1520_v47 = vmul.f32 %v1519_v12, %v3467_v62  ;;  %v1597_v38 = vadd.f32 0.001143296, %v1596_v25  ;;  %v1378_v6 = vor.u32 1.1754944e-38, %v1377_v37  ;;  %vm1373_vm2 = vmor %vm1371_vm1, %vm1372_vm0 }
 0x1f0   : > { %2031 = vmatmul.f32.gmra.mxu3 %v1874_v34  ;;  %v1370_v52 = vadd.f32 %v2366_v14, %v1369_v30  ;;  %v3821_v46 = vadd.f32 1.0, %v1444_v49  ;;  %v1636_v59 = vmul.f32 3.8918573e-05, %v3536_v40  ;;  %v1559_v16 = vadd.f32 0.014752088, %v1558_v26 }
 0x1f1   : > { %v2368_v2 = vpop.eup %2367  ;;  %v1483_v8 = vadd.f32 0.4994258, %v1482_v35  ;;  %v1521_v9 = vadd.f32 0.112945676, %v1520_v47  ;;  %v1598_v61 = vmul.f32 %v1597_v38, %v3531_v33  ;;  %vm1376_vm3 = vcmp.eq.f32.partialorder %v1375_v17, 8.507059e+37  ;;  %v4157_v47 = vld [vmem:[#allocation15_spill] sm:$0xff] }
 0x1f2   : > { %v1374_v7 = vsel %vm1373_vm2, %v2366_v14, %v1370_v52  ;;  %v1407_v41 = vmul.f32 %v2368_v2, %v3796_v27  ;;  %2369 = vrcp.f32 %v3821_v46  ;;  %vm1411_vm4 = vweird.f32 %v3796_v27 }
 0x1f3   : > { %v1379_v1 = vsel %vm1376_vm3, %v1378_v6, %v1374_v7  ;;  %v1415_v21 = vand.u32 2147483647, %v3796_v27  ;;  %v1417_v24 = vand.u32 2147483648, %v3796_v27  ;;  %v1484_v50 = vmul.f32 %v1483_v8, %v3412_v11 }
 0x1f4   : > { %v1380_v55 = vmul.f32 %v1379_v1, %v3547_v51  ;;  %v1408_v58 = vsub.f32 1.0, %v1407_v41  ;;  %v1522_v54 = vmul.f32 %v1521_v9, %v3467_v62  ;;  %vm1412_vm5 = vweird.f32 %v2368_v2 }
 0x1f5   : > { %v1560_v14 = vmul.f32 %v1559_v16, %v3475_v56  ;;  %v1599_v37 = vadd.f32 0.014752088, %v1598_v61  ;;  %v1637_v25 = vadd.f32 0.001143296, %v1636_v59  ;;  %v3835_v15 = vadd.f32 1.0, %v1484_v50  ;;  %vm1413_vm7 = vmor %vm1411_vm4, %vm1412_vm5 }
 0x1f6   : > { %v2222_v0 = vclamps-f32 %v1380_v55, 1.0  ;;  %v1409_v48 = vmul.f32 %v2368_v2, %v1408_v58  ;;  %v1523_v3 = vadd.f32 0.4994258, %v1522_v54  ;;  %vm3837_vm6 = vcmp.eq.f32.partialorder %v1415_v21, 8.507059e+37 }
 0x1f7   : > { %v1418_v51 = vor.u32 1.1754944e-38, %v1417_v24  ;;  %v1561_v17 = vadd.f32 0.112945676, %v1560_v14  ;;  %v1676_v11 = vmul.f32 3.8918573e-05, %v3604_v36  ;;  %2371 = vrcp.f32 %v3835_v15 }
 0x1f8   : > { %v2370_v4 = vpop.eup %2369  ;;  %v1843_v12 = vadd.f32 1.0, %v2222_v0  ;;  %v1410_v18 = vadd.f32 %v2368_v2, %v1409_v48  ;;  %v1600_v34 = vmul.f32 %v1599_v37, %v3531_v33  ;;  %v1455_v49 = vand.u32 2147483647, %v3821_v46 }
 0x1f9   : > { %v1447_v30 = vmul.f32 %v2370_v4, %v3821_v46  ;;  %v1457_v26 = vand.u32 2147483648, %v3821_v46  ;;  %v1638_v35 = vmul.f32 %v1637_v25, %v3536_v40  ;;  %v1524_v6 = vmul.f32 %v1523_v3, %v3467_v62 }
 0x1fa   : > { %v1875_v38 = vmul.f32 %v1843_v12, %v4157_v47  ;;  %v1414_v52 = vsel %vm1413_vm7, %v2368_v2, %v1410_v18  ;;  %v1562_v59 = vmul.f32 %v1561_v17, %v3475_v56  ;;  %vm1451_vm8 = vweird.f32 %v3821_v46 }
 0x1fb   : > { %v1419_v8 = vsel %vm3837_vm6, %v1418_v51, %v1414_v52  ;;  %v1448_v27 = vsub.f32 1.0, %v1447_v30  ;;  %v1677_v9 = vadd.f32 0.001143296, %v1676_v11  ;;  %v3858_v61 = vadd.f32 1.0, %v1524_v6  ;;  %v4160_v51 = vld [vmem:[#allocation23_spill] sm:$0xff] }
 0x1fc   : > { %1969 = vmatmul.f32.gmra.mxu2 %v1875_v38  ;;  %v1420_v16 = vmul.f32 %v1419_v8, %v3661_v45  ;;  %v1563_v7 = vadd.f32 0.4994258, %v1562_v59  ;;  %v1601_v41 = vadd.f32 0.112945676, %v1600_v34  ;;  %vm1452_vm9 = vweird.f32 %v2370_v4 }
 0x1fd   : > { %v1449_v1 = vmul.f32 %v2370_v4, %v1448_v27  ;;  %vm3860_vm10 = vcmp.eq.f32.partialorder %v1455_v49, 8.507059e+37  ;;  %v1639_v2 = vadd.f32 0.014752088, %v1638_v35  ;;  %v2372_v21 = vpop.eup %2371  ;;  %v1458_v55 = vor.u32 1.1754944e-38, %v1457_v26  ;;  %vm1453_vm12 = vmor %vm1451_vm8, %vm1452_vm9 }
 0x1fe   : > { %v2223_v24 = vclamps-f32 %v1420_v16, 1.0  ;;  %vm1491_vm11 = vweird.f32 %v3835_v15  ;;  %2373 = vrcp.f32 %v3858_v61  ;;  %v1487_v45 = vmul.f32 %v2372_v21, %v3835_v15 }
 0x1ff   : > { %v1450_v58 = vadd.f32 %v2370_v4, %v1449_v1  ;;  %v1495_v50 = vand.u32 2147483647, %v3835_v15  ;;  %v1678_v54 = vmul.f32 %v1677_v9, %v3604_v36  ;;  %v1497_v37 = vand.u32 2147483648, %v3835_v15 }
 0x200   : > { %v1844_v14 = vadd.f32 1.0, %v2223_v24  ;;  %v1564_v25 = vmul.f32 %v1563_v7, %v3475_v56  ;;  %v1602_v0 = vmul.f32 %v1601_v41, %v3531_v33  ;;  %v1488_v3 = vsub.f32 1.0, %v1487_v45 }
 0x201   : > { %v1454_v48 = vsel %vm1453_vm12, %v2370_v4, %v1450_v58  ;;  %vm1492_vm13 = vweird.f32 %v2372_v21  ;;  %v1640_v10 = vmul.f32 %v1639_v2, %v3536_v40  ;;  %v1679_v56 = vadd.f32 0.014752088, %v1678_v54  ;;  %v4163_v2 = vld [vmem:[#allocation16_spill] sm:$0xff] }
 0x202   : > { %v1876_v17 = vmul.f32 %v1844_v14, %v4160_v51  ;;  %v1459_v11 = vsel %vm3860_vm10, %v1458_v55, %v1454_v48  ;;  %v3878_v12 = vadd.f32 1.0, %v1564_v25  ;;  %v1603_v46 = vadd.f32 0.4994258, %v1602_v0  ;;  %vm1493_vm15 = vmor %vm1491_vm11, %vm1492_vm13 }
 0x203   : > { %v1460_v18 = vmul.f32 %v1459_v11, %v3729_v63  ;;  %v1489_v34 = vmul.f32 %v2372_v21, %v1488_v3  ;;  %v1641_v30 = vadd.f32 0.112945676, %v1640_v10  ;;  %vm3881_vm14 = vcmp.eq.f32.partialorder %v1495_v50, 8.507059e+37 }
 0x204   : > { %v2374_v49 = vpop.eup %2373  ;;  %2034 = vmatmul.f32.gmra.mxu3 %v1876_v17  ;;  %v1498_v26 = vor.u32 1.1754944e-38, %v1497_v37  ;;  %2375 = vrcp.f32 %v3878_v12  ;;  %v1716_v35 = vmul.f32 3.8918573e-05, %v3613_v31  ;;  %v1535_v63 = vand.u32 2147483647, %v3858_v61 }
 0x205   : > { %v2224_v47 = vclamps-f32 %v1460_v18, 1.0  ;;  %v1490_v38 = vadd.f32 %v2372_v21, %v1489_v34  ;;  %v1527_v52 = vmul.f32 %v2374_v49, %v3858_v61  ;;  %vm1532_vm0 = vweird.f32 %v2374_v49  ;;  %v4166_v34 = vld [vmem:[#allocation17_spill] sm:$0xff] }
 0x206   : > { %v1537_v6 = vand.u32 2147483648, %v3858_v61  ;;  %v1604_v59 = vmul.f32 %v1603_v46, %v3531_v33  ;;  %v1642_v8 = vmul.f32 %v1641_v30, %v3536_v40  ;;  %v1680_v7 = vmul.f32 %v1679_v56, %v3604_v36 }
 0x207   : > { %v1845_v27 = vadd.f32 1.0, %v2224_v47  ;;  %v1494_v9 = vsel %vm1493_vm15, %v2372_v21, %v1490_v38  ;;  %v1528_v16 = vsub.f32 1.0, %v1527_v52  ;;  %v1717_v15 = vadd.f32 0.001143296, %v1716_v35 }
 0x208   : > { %v1499_v41 = vsel %vm3881_vm14, %v1498_v26, %v1494_v9  ;;  %v3898_v1 = vadd.f32 1.0, %v1604_v59  ;;  %v1643_v62 = vadd.f32 0.4994258, %v1642_v8  ;;  %v1681_v33 = vadd.f32 0.112945676, %v1680_v7 }
 0x209   : > { %v1877_v24 = vmul.f32 %v1845_v27, %v4163_v2  ;;  %v1500_v55 = vmul.f32 %v1499_v41, %v3737_v28  ;;  %v1529_v58 = vmul.f32 %v2374_v49, %v1528_v16  ;;  %vm1531_vm1 = vweird.f32 %v3858_v61 }
 0x20a   : > { %v2376_v45 = vpop.eup %2375  ;;  %vm3903_vm2 = vcmp.eq.f32.partialorder %v1535_v63, 8.507059e+37  ;;  %v1538_v50 = vor.u32 1.1754944e-38, %v1537_v6  ;;  %2377 = vrcp.f32 %v3898_v1  ;;  %v1575_v25 = vand.u32 2147483647, %v3878_v12  ;;  %vm1533_vm3 = vmor %vm1531_vm1, %vm1532_vm0 }
 0x20b   : > { %1972 = vmatmul.f32.gmra.mxu2 %v1877_v24  ;;  %v2225_v54 = vclamps-f32 %v1500_v55, 1.0  ;;  %v1530_v14 = vadd.f32 %v2374_v49, %v1529_v58  ;;  %v1567_v37 = vmul.f32 %v2376_v45, %v3878_v12  ;;  %vm1572_vm4 = vweird.f32 %v2376_v45 }
 0x20c   : > { %v1577_v28 = vand.u32 2147483648, %v3878_v12  ;;  %v1644_v61 = vmul.f32 %v1643_v62, %v3536_v40  ;;  %v1682_v0 = vmul.f32 %v1681_v33, %v3604_v36  ;;  %v1718_v51 = vmul.f32 %v1717_v15, %v3613_v31  ;;  %v4169_v15 = vld [vmem:[#allocation19_spill] sm:$0xff] }
 0x20d   : > { %v1846_v48 = vadd.f32 1.0, %v2225_v54  ;;  %v1534_v3 = vsel %vm1533_vm3, %v2374_v49, %v1530_v14  ;;  %v1568_v10 = vsub.f32 1.0, %v1567_v37  ;;  %v1756_v18 = vmul.f32 3.8918573e-05, %v3708_v13 }
 0x20e   : > { %v1539_v17 = vsel %vm3903_vm2, %v1538_v50, %v1534_v3  ;;  %v3917_v11 = vadd.f32 1.0, %v1644_v61  ;;  %v1683_v46 = vadd.f32 0.4994258, %v1682_v0  ;;  %v1719_v4 = vadd.f32 0.014752088, %v1718_v51  ;;  %v4172_v51 = vld [vmem:[#allocation31_spill] sm:$0xff] }
 0x20f   : > { %v1878_v30 = vmul.f32 %v1846_v48, %v4166_v34  ;;  %v1540_v56 = vmul.f32 %v1539_v17, %v3744_v44  ;;  %v1569_v40 = vmul.f32 %v2376_v45, %v1568_v10  ;;  %vm1571_vm5 = vweird.f32 %v3878_v12 }
 0x210   : > { %v2378_v26 = vpop.eup %2377  ;;  %vm3923_vm6 = vcmp.eq.f32.partialorder %v1575_v25, 8.507059e+37  ;;  %v1578_v35 = vor.u32 1.1754944e-38, %v1577_v28  ;;  %2379 = vrcp.f32 %v3917_v11  ;;  %v1615_v63 = vand.u32 2147483647, %v3898_v1  ;;  %vm1573_vm7 = vmor %vm1571_vm5, %vm1572_vm4 }
 0x211   : > { %2037 = vmatmul.f32.gmra.mxu3 %v1878_v30  ;;  %v2226_v47 = vclamps-f32 %v1540_v56, 1.0  ;;  %v1570_v38 = vadd.f32 %v2376_v45, %v1569_v40  ;;  %v1607_v52 = vmul.f32 %v2378_v26, %v3898_v1  ;;  %vm1612_vm8 = vweird.f32 %v2378_v26 }
 0x212   : > { %v1617_v44 = vand.u32 2147483648, %v3898_v1  ;;  %v1684_v12 = vmul.f32 %v1683_v46, %v3604_v36  ;;  %v1720_v6 = vmul.f32 %v1719_v4, %v3613_v31  ;;  %v1757_v9 = vadd.f32 0.001143296, %v1756_v18 }
 0x213   : > { %v1847_v59 = vadd.f32 1.0, %v2226_v47  ;;  %v1574_v8 = vsel %vm1573_vm7, %v2376_v45, %v1570_v38  ;;  %v1608_v27 = vsub.f32 1.0, %v1607_v52  ;;  %v1796_v62 = vmul.f32 3.8918573e-05, %v3732_v60  ;;  %v4174_v45 = vld [vmem:[#allocation29_spill] sm:$0xff] }
 0x214   : > { %v1579_v16 = vsel %vm3923_vm6, %v1578_v35, %v1574_v8  ;;  %v3936_v7 = vadd.f32 1.0, %v1684_v12  ;;  %v1721_v41 = vadd.f32 0.112945676, %v1720_v6  ;;  %v1758_v36 = vmul.f32 %v1757_v9, %v3708_v13 }
 0x215   : > { %v1879_v2 = vmul.f32 %v1847_v59, %v4169_v15  ;;  %v1580_v24 = vmul.f32 %v1579_v16, %v3748_v42  ;;  %v1609_v55 = vmul.f32 %v2378_v26, %v1608_v27  ;;  %v1787_v33 = vmul.f32 %v3802_v23, %v3732_v60  ;;  %v4173_v16 = vld [vmem:[#allocation18_spill] sm:$0xff] }
 0x216   : > { %v2380_v58 = vpop.eup %2379  ;;  %vm1611_vm9 = vweird.f32 %v3898_v1  ;;  %vm3945_vm10 = vcmp.eq.f32.partialorder %v1615_v63, 8.507059e+37  ;;  %2381 = vrcp.f32 %v3936_v7  ;;  %v1618_v54 = vor.u32 1.1754944e-38, %v1617_v44 }
 0x217   : > { %1975 = vmatmul.f32.gmra.mxu2 %v1879_v2  ;;  %v2227_v21 = vclamps-f32 %v1580_v24, 1.0  ;;  %v1610_v50 = vadd.f32 %v2378_v26, %v1609_v55  ;;  %v1647_v42 = vmul.f32 %v2380_v58, %v3917_v11  ;;  %vm1613_vm11 = vmor %vm1611_vm9, %vm1612_vm8  ;;  %v1655_v14 = vand.u32 2147483647, %v3917_v11 }
 0x218   : > { %v1657_v23 = vand.u32 2147483648, %v3917_v11  ;;  %v1722_v1 = vmul.f32 %v1721_v41, %v3613_v31  ;;  %v1759_v37 = vadd.f32 0.014752088, %v1758_v36  ;;  %v1797_v0 = vadd.f32 0.001143296, %v1796_v62 }
 0x219   : > { %v1848_v25 = vadd.f32 1.0, %v2227_v21  ;;  %v1614_v28 = vsel %vm1613_vm11, %v2378_v26, %v1610_v50  ;;  %v1648_v61 = vsub.f32 1.0, %v1647_v42  ;;  %vm1652_vm12 = vweird.f32 %v2380_v58 }
 0x21a   : > { %v1619_v48 = vsel %vm3945_vm10, %v1618_v54, %v1614_v28  ;;  %v1723_v3 = vadd.f32 0.4994258, %v1722_v1  ;;  %v1760_v10 = vmul.f32 %v1759_v37, %v3708_v13  ;;  %v1798_v34 = vmul.f32 %v1797_v0, %v3732_v60  ;;  %v1940_v0 = vpop.f32.mrf.mxu2 }
 0x21b   : > { %v1880_v17 = vmul.f32 %v1848_v25, %v4172_v51  ;;  %v1620_v46 = vmul.f32 %v1619_v48, %v3752_v32  ;;  %v1649_v18 = vmul.f32 %v2380_v58, %v1648_v61  ;;  %v1749_v56 = vmul.f32 %v3808_v57, %v3708_v13  ;;  %v4175_v25 = vld [vmem:[#allocation20_spill] sm:$0xff]  ;;  %v2005_v48 = vpop.f32.mrf.mxu3 }
 0x21c   : > { %v2382_v30 = vpop.eup %2381  ;;  %v1788_v40 = vadd.f32 0.0036580483, %v1787_v33  ;;  %v1724_v4 = vmul.f32 %v1723_v3, %v3613_v31  ;;  %v1761_v26 = vadd.f32 0.112945676, %v1760_v10  ;;  %vm1651_vm13 = vweird.f32 %v3917_v11 }
 0x21d   : > { %2040 = vmatmul.f32.gmra.mxu3 %v1880_v17  ;;  %v2228_v49 = vclamps-f32 %v1620_v46, 1.0  ;;  %v1650_v35 = vadd.f32 %v2380_v58, %v1649_v18  ;;  %v1687_v47 = vmul.f32 %v2382_v30, %v3936_v7  ;;  %vm1653_vm14 = vmor %vm1651_vm13, %vm1652_vm12  ;;  %v1658_v32 = vor.u32 1.1754944e-38, %v1657_v23 }
 0x21e   : > { %v3967_v38 = vadd.f32 1.0, %v1724_v4  ;;  %v1762_v52 = vmul.f32 %v1761_v26, %v3708_v13  ;;  %v1799_v63 = vadd.f32 0.014752088, %v1798_v34  ;;  %vm1656_vm15 = vcmp.eq.f32.partialorder %v1655_v14, 8.507059e+37 }
 0x21f   : > { %v1849_v57 = vadd.f32 1.0, %v2228_v49  ;;  %v1654_v44 = vsel %vm1653_vm14, %v2380_v58, %v1650_v35  ;;  %v1688_v12 = vsub.f32 1.0, %v1687_v47  ;;  %v1695_v59 = vand.u32 2147483647, %v3936_v7 }
 0x220   : > { %v1659_v6 = vsel %vm1656_vm15, %v1658_v32, %v1654_v44  ;;  %v1697_v8 = vand.u32 2147483648, %v3936_v7  ;;  %2383 = vrcp.f32 %v3967_v38  ;;  %vm1692_vm0 = vweird.f32 %v2382_v30 }
 0x221   : > { %v1881_v11 = vmul.f32 %v1849_v57, %v3740_v39  ;;  %v1660_v27 = vmul.f32 %v1659_v6, %v3755_v22  ;;  %v1689_v9 = vmul.f32 %v2382_v30, %v1688_v12  ;;  %v506_v41 = vmul.f32 0.5, %v4173_v16 }
 0x222   : > { %v1750_v62 = vadd.f32 0.05243302, %v1749_v56  ;;  %v1763_v15 = vadd.f32 0.4994258, %v1762_v52  ;;  %v1800_v2 = vmul.f32 %v1799_v63, %v3732_v60  ;;  %v1713_v24 = vmul.f32 %v3760_v5, %v3613_v31  ;;  %v4176_v63 = vld [vmem:[#allocation30_spill] sm:$0xff] }
 0x223   : > { %1978 = vmatmul.f32.gmra.mxu2 %v1881_v11  ;;  %v2229_v55 = vclamps-f32 %v1660_v27, 1.0  ;;  %v1690_v36 = vadd.f32 %v2382_v30, %v1689_v9  ;;  %vm1691_vm1 = vweird.f32 %v3936_v7  ;;  %v1789_v39 = vmul.f32 %v1788_v40, %v3732_v60  ;;  %v2008_v11 = vpop.f32.mrf.mxu3 }
 0x224   : > { %vm1693_vm2 = vmor %vm1691_vm1, %vm1692_vm0  ;;  %v1698_v22 = vor.u32 1.1754944e-38, %v1697_v8  ;;  %v1764_v58 = vmul.f32 %v1763_v15, %v3708_v13  ;;  %v1801_v33 = vadd.f32 0.112945676, %v1800_v2  ;;  %v1675_v21 = vmul.f32 %v3800_v19, %v4174_v45  ;;  %v3994_v19 = vld [vmem:[%s4094_s4] ss:$0 sm:$0xff]  ;;  %v1943_v8 = vpop.f32.mrf.mxu2 }
 0x225   : > { %v1850_v50 = vadd.f32 1.0, %v2229_v55  ;;  %v1694_v54 = vsel %vm1693_vm2, %v2382_v30, %v1690_v36  ;;  %vm1696_vm3 = vcmp.eq.f32.partialorder %v1695_v59, 8.507059e+37  ;;  %v1751_v31 = vmul.f32 %v1750_v62, %v3708_v13 }
 0x226   : > { %v2384_v42 = vpop.eup %2383  ;;  %v1699_v5 = vsel %vm1696_vm3, %v1698_v22, %v1694_v54  ;;  %v3985_v14 = vadd.f32 1.0, %v1764_v58  ;;  %v1802_v7 = vmul.f32 %v1801_v33, %v3732_v60  ;;  %v507_v28 = vmul.f32 0.5, %v4175_v25 }
 0x227   : > { %v1882_v23 = vmul.f32 %v1850_v50, %v506_v41  ;;  %v1700_v1 = vmul.f32 %v1699_v5, %v1675_v21  ;;  %v1727_v37 = vmul.f32 %v2384_v42, %v3967_v38  ;;  %v1790_v61 = vadd.f32 0.05243302, %v1789_v39  ;;  %v4177_v39 = vld [vmem:[#allocation28_spill] sm:$0xff] }
 0x228   : > { %2385 = vrcp.f32 %v3985_v14  ;;  %v1714_v3 = vadd.f32 1.1283791, %v1713_v24  ;;  %v1803_v17 = vadd.f32 0.4994258, %v1802_v7  ;;  %v1752_v46 = vadd.f32 0.18741608, %v1751_v31 }
 0x229   : > { %2043 = vmatmul.f32.gmra.mxu3 %v1882_v23  ;;  %v2230_v10 = vclamps-f32 %v1700_v1, 1.0  ;;  %v1728_v51 = vsub.f32 1.0, %v1727_v37  ;;  %v1735_v18 = vand.u32 2147483647, %v3967_v38  ;;  %v1737_v34 = vand.u32 2147483648, %v3967_v38 }
 0x22a   : > { %v1941_v30 = vadd.f32 %v3994_v19, %v1940_v0  ;;  %vm1732_vm4 = vweird.f32 %v2384_v42  ;;  %v1804_v4 = vmul.f32 %v1803_v17, %v3732_v60  ;;  %v1791_v26 = vmul.f32 %v1790_v61, %v3732_v60 }
 0x22b   : > { %v1851_v56 = vadd.f32 1.0, %v2230_v10  ;;  %v1729_v40 = vmul.f32 %v2384_v42, %v1728_v51  ;;  %vm1731_vm5 = vweird.f32 %v3967_v38  ;;  %v1715_v57 = vmul.f32 %v1714_v3, %v4176_v63  ;;  %v2011_v1 = vpop.f32.mrf.mxu3 }
 0x22c   : > { %v2006_v49 = vadd.f32 %v2005_v48, %v1941_v30  ;;  %v4002_v32 = vadd.f32 1.0, %v1804_v4  ;;  %v1753_v44 = vmul.f32 %v1752_v46, %v3708_v13  ;;  %vm1733_vm6 = vmor %vm1731_vm5, %vm1732_vm4  ;;  %v1738_v12 = vor.u32 1.1754944e-38, %v1737_v34  ;;  %v1946_v23 = vpop.f32.mrf.mxu2 }
 0x22d   : > { %v1883_v35 = vmul.f32 %v1851_v56, %v507_v28  ;;  %v1730_v47 = vadd.f32 %v2384_v42, %v1729_v40  ;;  %vm1736_vm7 = vcmp.eq.f32.partialorder %v1735_v18, 8.507059e+37  ;;  %v1792_v27 = vadd.f32 0.18741608, %v1791_v26 }
 0x22e   : > { %v2386_v52 = vpop.eup %2385  ;;  %2053 = vst [vmem:[%s4008_s28] sm:$0xff] %v2006_v49  ;;  %2387 = vrcp.f32 %v4002_v32  ;;  %v1944_v16 = vadd.f32 %v3994_v19, %v1943_v8  ;;  %v1754_v41 = vadd.f32 1.1283791, %v1753_v44  ;;  %v1775_v62 = vand.u32 2147483647, %v3985_v14 }
 0x22f   : > { %1981 = vmatmul.f32.gmra.mxu2 %v1883_v35  ;;  %v1734_v6 = vsel %vm1733_vm6, %v2384_v42, %v1730_v47  ;;  %v1767_v59 = vmul.f32 %v2386_v52, %v3985_v14  ;;  %v1777_v15 = vand.u32 2147483648, %v3985_v14  ;;  %vm1772_vm8 = vweird.f32 %v2386_v52 }
 0x230   : > { %v1739_v38 = vsel %vm1736_vm7, %v1738_v12, %v1734_v6  ;;  %v2009_v55 = vadd.f32 %v2008_v11, %v1944_v16  ;;  %v508_v22 = vmul.f32 0.5, %v4177_v39  ;;  %vm1771_vm9 = vweird.f32 %v3985_v14 }
 0x231   : > { %v1740_v13 = vmul.f32 %v1739_v38, %v1715_v57  ;;  %v1768_v9 = vsub.f32 1.0, %v1767_v59  ;;  %v1793_v45 = vmul.f32 %v1792_v27, %v3732_v60  ;;  %vm1773_vm10 = vmor %vm1771_vm9, %vm1772_vm8  ;;  %v1778_v21 = vor.u32 1.1754944e-38, %v1777_v15 }
 0x232   : > { %2054 = vst [vmem:[%s4008_s28 + $0x8] sm:$0xff] %v2009_v55  ;;  %v1755_v54 = vmul.f32 %v1754_v41, %v3676_v43  ;;  %vm1776_vm11 = vcmp.eq.f32.partialorder %v1775_v62, 8.507059e+37  ;;  %v1817_v14 = vand.u32 2147483648, %v4002_v32  ;;  %v1947_v60 = vadd.f32 %v3994_v19, %v1946_v23 }
 0x233   : > { %v2231_v2 = vclamps-f32 %v1740_v13, 1.0  ;;  %v1769_v24 = vmul.f32 %v2386_v52, %v1768_v9  ;;  %v1794_v25 = vadd.f32 1.1283791, %v1793_v45  ;;  %v1815_v61 = vand.u32 2147483647, %v4002_v32  ;;  %v2014_v40 = vpop.f32.mrf.mxu3 }
 0x234   : > { %v2388_v36 = vpop.eup %2387  ;;  %v2012_v0 = vadd.f32 %v2011_v1, %v1947_v60  ;;  %vm1811_vm13 = vweird.f32 %v4002_v32  ;;  %v509_v3 = vmul.f32 0.5, %v3657_v20  ;;  %v1818_v51 = vor.u32 1.1754944e-38, %v1817_v14  ;;  %v1949_v56 = vpop.f32.mrf.mxu2 }
 0x235   : > { %v1852_v58 = vadd.f32 1.0, %v2231_v2  ;;  %v1770_v33 = vadd.f32 %v2386_v52, %v1769_v24  ;;  %v1807_v50 = vmul.f32 %v2388_v36, %v4002_v32  ;;  %vm1812_vm12 = vweird.f32 %v2388_v36 }
 0x236   : > { %vm1813_vm14 = vmor %vm1811_vm13, %vm1812_vm12  ;;  %2055 = vst [vmem:[%s4008_s28 + $0x10] sm:$0xff] %v2012_v0  ;;  %v1795_v17 = vmul.f32 %v1794_v25, %v3703_v53  ;;  %vm1816_vm15 = vcmp.eq.f32.partialorder %v1815_v61, 8.507059e+37  ;;  %v1950_v4 = vadd.f32 %v3994_v19, %v1949_v56  ;;  %v510_v49 = vmul.f32 0.5, %v3686_v29 }
 0x237   : > { %v1884_v42 = vmul.f32 %v1852_v58, %v508_v22  ;;  %v1774_v31 = vsel %vm1773_vm10, %v2386_v52, %v1770_v33  ;;  %v1808_v7 = vsub.f32 1.0, %v1807_v50 }
 0x238   : > { %v1779_v5 = vsel %vm1776_vm11, %v1778_v21, %v1774_v31  ;;  %v2015_v20 = vadd.f32 %v2014_v40, %v1950_v4 }
 0x239   : > { %2046 = vmatmul.f32.gmra.mxu3 %v1884_v42  ;;  %v1780_v37 = vmul.f32 %v1779_v5, %v1755_v54  ;;  %v1809_v28 = vmul.f32 %v2388_v36, %v1808_v7 }
 0x23a   : > { %2056 = vst [vmem:[%s4008_s28 + $0x18] sm:$0xff] %v2015_v20 }
 0x23b   : > { %v2232_v43 = vclamps-f32 %v1780_v37, 1.0  ;;  %v1810_v48 = vadd.f32 %v2388_v36, %v1809_v28  ;;  %v2017_v32 = vpop.f32.mrf.mxu3 }
 0x23c   : > { %v1952_v53 = vpop.f32.mrf.mxu2 }
 0x23d   : > { %v1853_v10 = vadd.f32 1.0, %v2232_v43  ;;  %v1814_v46 = vsel %vm1813_vm14, %v2388_v36, %v1810_v48  ;;  %v1953_v52 = vadd.f32 %v3994_v19, %v1952_v53 }
 0x23e   : > { %v1819_v34 = vsel %vm1816_vm15, %v1818_v51, %v1814_v46 }
 0x23f   : > { %v1885_v18 = vmul.f32 %v1853_v10, %v509_v3  ;;  %v1820_v30 = vmul.f32 %v1819_v34, %v1795_v17  ;;  %v2018_v63 = vadd.f32 %v2017_v32, %v1953_v52 }
 0x241   : > { %1984 = vmatmul.f32.gmra.mxu2 %v1885_v18  ;;  %v2233_v26 = vclamps-f32 %v1820_v30, 1.0  ;;  %2057 = vst [vmem:[%s4008_s28 + $0x20] sm:$0xff] %v2018_v63 }
 0x243   : > { %v1854_v35 = vadd.f32 1.0, %v2233_v26  ;;  %v2020_v44 = vpop.f32.mrf.mxu3 }
 0x244   : > { %v1955_v57 = vpop.f32.mrf.mxu2 }
 0x245   : > { %v1886_v47 = vmul.f32 %v1854_v35, %v510_v49  ;;  %v1956_v12 = vadd.f32 %v3994_v19, %v1955_v57 }
 0x247   : > { %2049 = vmatmul.f32.gmra.mxu3 %v1886_v47  ;;  %v2021_v6 = vadd.f32 %v2020_v44, %v1956_v12 }
 0x249   : > { %2058 = vst [vmem:[%s4008_s28 + $0x28] sm:$0xff] %v2021_v6 }
 0x24b   : > { %v2023_v59 = vpop.f32.mrf.mxu3 }
 0x24c   : > { %v1958_v29 = vpop.f32.mrf.mxu2 }
 0x24d   : > { %v1959_v38 = vadd.f32 %v3994_v19, %v1958_v29 }
 0x24f   : > { %v2024_v8 = vadd.f32 %v2023_v59, %v1959_v38 }
 0x251   : > { %2059 = vst [vmem:[%s4008_s28 + $0x30] sm:$0xff] %v2024_v8 }
 0x253   : > { %v2026_v27 = vpop.f32.mrf.mxu3 }
 0x254   : > { %v1961_v11 = vpop.f32.mrf.mxu2 }
 0x255   : > { %v1962_v13 = vadd.f32 %v3994_v19, %v1961_v11 }
 0x257   : > { %v2027_v9 = vadd.f32 %v2026_v27, %v1962_v13 }
 0x259   : > { %2060 = vst [vmem:[%s4008_s28 + $0x38] sm:$0xff] %v2027_v9 }
 0x25c   : > { %v1964_v16 = vpop.f32.mrf.mxu2 }
 0x25d   : > { %v1965_v41 = vadd.f32 %v3994_v19, %v1964_v16 }
 0x261   : > { %v2029_v62 = vpop.f32.mrf.mxu3 }
 0x262   : > { %v2030_v15 = vadd.f32 %v2029_v62, %v1965_v41 }
 0x264   : > { %2061 = vst [vmem:[%s4008_s28 + $0x40] sm:$0xff] %v2030_v15 }
 0x271   : > { %v1967_v2 = vpop.f32.mrf.mxu2 }
 0x272   : > { %v1968_v24 = vadd.f32 %v3994_v19, %v1967_v2 }
 0x273   : > { %v2032_v55 = vpop.f32.mrf.mxu3 }
 0x274   : > { %v2033_v36 = vadd.f32 %v2032_v55, %v1968_v24 }
 0x276   : > { %2062 = vst [vmem:[%s4008_s28 + $0x48] sm:$0xff] %v2033_v36 }
 0x27f   : > { %v1970_v39 = vpop.f32.mrf.mxu2 }
 0x280   : > { %v1971_v22 = vadd.f32 %v3994_v19, %v1970_v39 }
 0x287   : > { %v2035_v58 = vpop.f32.mrf.mxu3 }
 0x288   : > { %v2036_v33 = vadd.f32 %v2035_v58, %v1971_v22 }
 0x28a   : > { %2063 = vst [vmem:[%s4008_s28 + $0x50] sm:$0xff] %v2036_v33 }
 0x28e   : > { %v1973_v45 = vpop.f32.mrf.mxu2 }
 0x28f   : > { %v1974_v21 = vadd.f32 %v3994_v19, %v1973_v45 }
 0x294   : > { %v2038_v50 = vpop.f32.mrf.mxu3 }
 0x295   : > { %v2039_v54 = vadd.f32 %v2038_v50, %v1974_v21 }
 0x297   : > { %2064 = vst [vmem:[%s4008_s28 + $0x58] sm:$0xff] %v2039_v54 }
 0x29a   : > { %v1976_v42 = vpop.f32.mrf.mxu2 }
 0x29b   : > { %v1977_v31 = vadd.f32 %v3994_v19, %v1976_v42 }
 0x2a0   : > { %v2041_v5 = vpop.f32.mrf.mxu3 }
 0x2a1   : > { %v2042_v7 = vadd.f32 %v2041_v5, %v1977_v31 }
 0x2a3   : > { %2065 = vst [vmem:[%s4008_s28 + $0x60] sm:$0xff] %v2042_v7 }
 0x2a6   : > { %v1979_v23 = vpop.f32.mrf.mxu2 }
 0x2a7   : > { %v1980_v1 = vadd.f32 %v3994_v19, %v1979_v23 }
 0x2ac   : > { %v2044_v37 = vpop.f32.mrf.mxu3 }
 0x2ad   : > { %v2045_v14 = vadd.f32 %v2044_v37, %v1980_v1 }
 0x2af   : > { %2066 = vst [vmem:[%s4008_s28 + $0x68] sm:$0xff] %v2045_v14 }
 0x2b2   : > { %v1982_v60 = vpop.f32.mrf.mxu2 }
 0x2b3   : > { %v1983_v25 = vadd.f32 %v3994_v19, %v1982_v60 }
 0x2bc   : > { %v2047_v28 = vpop.f32.mrf.mxu3 }
 0x2bd   : > { %v2048_v61 = vadd.f32 %v2047_v28, %v1983_v25 }
 0x2bf   : > { %2067 = vst [vmem:[%s4008_s28 + $0x70] sm:$0xff] %v2048_v61 }
 0x2c4   : > { %v1985_v43 = vpop.f32.mrf.mxu2 }
 0x2c5   : > { %v1986_v0 = vadd.f32 %v3994_v19, %v1985_v43 }
 0x2ca   : > { %v2050_v48 = vpop.f32.mrf.mxu3 }
 0x2cb   : > { %v2051_v3 = vadd.f32 %v2050_v48, %v1986_v0 }
 0x2cd   : > { %2068 = vst [vmem:[%s4008_s28 + $0x78] sm:$0xff] %v2051_v3 }
 0x2ce   : > { %2536 = shalt.err (!%p2533_p10)
}
 0x2cf   : > { %s2592_s17 = smov 128   ;;  %s2593_s29 = smov 8  }
 0x2d0   : > { %2255 = dma.vmem_to_hbm [thread:$0]  (%p2709_p3), %s2083_s13, 2048, %s2085_s12, %s2070_s14, %s2592_s17, %s2592_s17, %s2593_s29  }
 0x2d1 PF: > { %s2099_s28 = sand.u32 1, %s2571_s18   ;;  %p4178_p12 = scmp.ge.s32.totalorder %s2583_s21, 2 }
 0x2d2   : > { %s2100_s16 = scalar_lea.sflag [#allocation4], %s2099_s28 }
 0x2d3   : > { %p2272_p13 = pnand %p4178_p12, %p2659_p6 }
 0x2d5   : > { %p2273_p0 = pneg %p2272_p13 }
 0x2d7   : > { %2566 = dma.done.wait (%p2273_p0), %s2100_s16, 2048  }
 0x2d8   : > { %2568 = vsyncadd (%p2273_p0), %s2100_s16, 4294965248  ;;  %p20_p5 = scmp.ge.s32.totalorder %s2696_s30, 4   ;;  %s4179_s18 = smov %s2575_s19 }
 0x2d9   : > { %s4180_s19 = smov %s2579_s20  ;;  %s4181_s20 = smov %s2705_s9 }
 0x2da   : > { %s4182_s21 = smov %s2696_s30  ;;  %22 = sbr.rel (!%p20_p5) target bundleno = 7 (0x7), region = 97 }
 0x2df   :  { %2106 = vsyncpa [#allocation3], 1 }
 0x2e0   :  { %2108 = vsyncpa [#allocation3 + $0x1], 1 }
 0x2e1   :  { %2109 = vsyncpa [#allocation6], 1 }
 0x2e2   :  { %2110 = vsyncpa [#allocation9], 1 }
 0x2e3   :  { %2111 = vsyncpa [#allocation4], 1 }
 0x2e4   :  { %2113 = vsyncpa [#allocation4 + $0x1], 1 }

</bundles_post_ra>
